<compile_context>
chip_gen: v5e
topology: v5e:2x2
jax: 0.10.0
libtpu: 0.0.40
codegen_flags: <defaults>
</compile_context>

<pallas_src>
import jax
import jax.numpy as jnp
from jax.experimental import pallas as pl
from jax.experimental.pallas import tpu as pltpu


def cross_stage_fusion_kernel(
    x2_ref, x3_ref, x4m_ref, xx_ref,            # [TB, D]   bf16 activations
    wcat2_ref, wcat3_ref, wcat4_ref, wcatx_ref,  # [D, 5D]   bf16  [w_i@wf | w_i@Wa1_i]
    bs2_ref, bs3_ref, bs4_ref, bsx_ref,          # [1, D]    f32   b_i @ wf
    bfused_ref,                                  # [1, 4D]   f32   sum_i b_i@Wa1_i + ba1
    wa2_ref, ba2_ref,                            # [4D, 4] bf16, [1, 4] f32
    bfin_ref,                                    # [1, D]    f32   final bias
    out_ref,                                     # [TB, D]
):
    f32 = jnp.float32
    bf16 = jnp.bfloat16
    D = wcat2_ref.shape[0]

    # One wide matmul per input: columns [:D] = branch-through-fc_final,
    # columns [D:] = contribution to the attention hidden layer.
    p2 = jnp.dot(x2_ref[...], wcat2_ref[...], preferred_element_type=f32)
    p3 = jnp.dot(x3_ref[...], wcat3_ref[...], preferred_element_type=f32)
    p4 = jnp.dot(x4m_ref[...], wcat4_ref[...], preferred_element_type=f32)
    px = jnp.dot(xx_ref[...], wcatx_ref[...], preferred_element_type=f32)

    # Attention hidden layer (== ReLU(concat(t_i) @ Wa1 + ba1) via pre-fused weights).
    h = jnp.maximum(
        p2[:, D:] + p3[:, D:] + p4[:, D:] + px[:, D:] + bfused_ref[...], 0.0)

    # Second attention layer (tiny N=4 matmul) + stable softmax over the 4 stages.
    logits = jnp.dot(h.astype(bf16), wa2_ref[...],
                     preferred_element_type=f32) + ba2_ref[...]        # [TB, 4]
    m = jnp.max(logits, axis=1, keepdims=True)
    e = jnp.exp(logits - m)
    attn = e * pl.reciprocal(jnp.sum(e, axis=1, keepdims=True), approx=True)

    # fc_final is folded into the branch weights: everything after the softmax
    # is pure VPU (no MXU work stalls behind the attention path).
    out = (attn[:, 0:1] * (p2[:, :D] + bs2_ref[...])
           + attn[:, 1:2] * (p3[:, :D] + bs3_ref[...])
           + attn[:, 2:3] * (p4[:, :D] + bs4_ref[...])
           + attn[:, 3:4] * (px[:, :D] + bsx_ref[...])
           + bfin_ref[...])
    out_ref[...] = out.astype(out_ref.dtype)


def prepare_params(p):
    """Fold fc_final and the concat->Wa1 layer into per-branch weights.

    Per branch i:
      Wcat_i = concat([w_i @ wf, w_i @ Wa1_i], axis=1)  -> [D, 5D] bf16
      bs_i   = b_i @ wf                                 -> [1, D]  f32
    Shared:
      bfused = sum_i b_i @ Wa1_i + ba1                  -> [1, 4D] f32
      wa2 (bf16, [4D,4]), ba2, bfin (f32)
    """
    D = p["w2"].shape[0]
    wa1, wf = p["wa1"], p["wf"]
    bf16 = jnp.bfloat16
    kp = {}
    bfused = p["ba1"].astype(jnp.float32)
    for name, wk, bk, blk_idx in (("2", "w2", "b2", 0), ("3", "w3", "b3", 1),
                                  ("4", "w4", "b4", 2), ("x", "wx", "bx", 3)):
        blk = wa1[blk_idx * D:(blk_idx + 1) * D, :]          # [D, 4D]
        w_final = p[wk] @ wf                                  # [D, D]
        w_attn = p[wk] @ blk                                  # [D, 4D]
        kp["wcat" + name] = jnp.concatenate([w_final, w_attn], axis=1).astype(bf16)
        kp["bs" + name] = p[bk] @ wf                          # [1, D] f32
        bfused = bfused + p[bk] @ blk
    kp["bfused"] = bfused
    kp["wa2"] = p["wa2"].astype(bf16)                         # [4D, 4]
    kp["ba2"] = p["ba2"]
    kp["bfin"] = p["bf"]
    return kp


def cross_stage_fusion(mil2, mil3, mil4, x4, kp, *, tb=None, out_dtype=jnp.bfloat16):
    """kp: dict from prepare_params(); activations are [B, D]."""
    B, D = mil2.shape
    if tb is None:
        tb = min(B, 256)
    assert B % tb == 0, "batch tile must divide B"
    assert tb % 16 == 0 or tb == B, "tb must be a multiple of 16 (bf16 sublane tile)"
    grid = (B // tb,)

    bf16 = jnp.bfloat16
    acts = tuple(a.astype(bf16) for a in (mil2, mil3, mil4, x4))
    weights = (kp["wcat2"], kp["wcat3"], kp["wcat4"], kp["wcatx"],
               kp["bs2"], kp["bs3"], kp["bs4"], kp["bsx"],
               kp["bfused"], kp["wa2"], kp["ba2"], kp["bfin"])
    args = acts + weights

    act_spec = pl.BlockSpec((tb, D), lambda i: (i, 0))

    def const_spec(a):
        # Full-array block, constant block index, single-buffered: VMEM-resident,
        # DMA'd once, no pointless double buffering of weights.
        return pl.BlockSpec(a.shape, lambda i: (0,) * a.ndim,
                            pipeline_mode=pl.Buffered(1))

    in_specs = [act_spec] * 4 + [const_spec(a) for a in weights]
    out_spec = pl.BlockSpec((tb, D), lambda i: (i, 0))

    # 4 x [tb,D]@[D,5D] + [tb,4D]@[4D,4] per tile; fc_final is folded away.
    flops = 2 * B * (20 * D * D + 16 * D)
    weight_bytes = sum(int(a.size) * a.dtype.itemsize for a in weights)
    act_bytes = sum(int(a.size) * a.dtype.itemsize for a in acts)
    out_bytes = B * D * jnp.dtype(out_dtype).itemsize
    cost = pl.CostEstimate(flops=flops, transcendentals=5 * B,
                           bytes_accessed=weight_bytes + act_bytes + out_bytes)

    # Explicit VMEM budget: single-buffered weights + double-buffered act/out tiles.
    vmem_needed = (weight_bytes
                   + 2 * 4 * tb * D * 2                       # bf16 activation tiles
                   + 2 * tb * D * jnp.dtype(out_dtype).itemsize)
    vmem_limit = min(max(int(vmem_needed * 1.5) + (4 << 20), 32 << 20), 128 << 20)

    # Megacore: only shard the batch across TCs when there is enough batch to
    # amortize the duplicated weight DMA (weight-HBM-bound for small B).
    semantics = ("parallel",) if B >= 512 else ("arbitrary",)

    return pl.pallas_call(
        cross_stage_fusion_kernel,
        out_shape=jax.ShapeDtypeStruct((B, D), out_dtype),
        grid=grid,
        in_specs=in_specs,
        out_specs=out_spec,
        compiler_params=pltpu.CompilerParams(
            dimension_semantics=semantics,
            vmem_limit_bytes=vmem_limit),
        cost_estimate=cost,
    )(*args)


def init_params(key, feature_dim):
    """Deterministic synthetic init in f32. Weights stored as [in, out]
    (pre-transposed relative to nn.Linear's [out, in]); biases as [1, out]."""
    D = feature_dim
    ks = jax.random.split(key, 12)

    def lin(kw, kb, fan_in, fan_out):
        bound = 1.0 / jnp.sqrt(fan_in)
        w = jax.random.uniform(kw, (fan_in, fan_out), jnp.float32, -bound, bound)
        b = jax.random.uniform(kb, (1, fan_out), jnp.float32, -bound, bound)
        return w, b

    w2, b2 = lin(ks[0], ks[1], D, D)
    w3, b3 = lin(ks[2], ks[3], D, D)
    w4, b4 = lin(ks[4], ks[5], D, D)
    wx, bx = lin(ks[6], ks[7], D, D)
    wa1, ba1 = lin(ks[8], ks[9], 4 * D, 4 * D)
    wa2, ba2 = lin(ks[10], ks[11], 4 * D, 4)
    wf, bf = lin(jax.random.fold_in(key, 100), jax.random.fold_in(key, 101), D, D)
    return dict(w2=w2, b2=b2, w3=w3, b3=b3, w4=w4, b4=b4, wx=wx, bx=bx,
                wa1=wa1, ba1=ba1, wa2=wa2, ba2=ba2, wf=wf, bf=bf)


def reference(mil2, mil3, mil4, x4, p):
    """Pure-JAX f32 replica of CrossStageFusionModule.forward (unfused path)."""
    t2 = mil2 @ p["w2"] + p["b2"]
    t3 = mil3 @ p["w3"] + p["b3"]
    t4 = mil4 @ p["w4"] + p["b4"]
    tx = x4 @ p["wx"] + p["bx"]
    feats = jnp.concatenate([t2, t3, t4, tx], axis=1)
    h = jnp.maximum(feats @ p["wa1"] + p["ba1"], 0.0)
    attn = jax.nn.softmax(h @ p["wa2"] + p["ba2"], axis=1)
    weighted = (attn[:, 0:1] * t2 + attn[:, 1:2] * t3
                + attn[:, 2:3] * t4 + attn[:, 3:4] * tx)
    return weighted @ p["wf"] + p["bf"]


def reference_folded(mil2, mil3, mil4, x4, kp):
    """Apples-to-apples reference: same folded bf16 weights / bf16 activations as
    the kernel, upcast to f32, exact softmax. Residual kernel differences are
    MXU accumulation order, approx reciprocal, and output-dtype rounding."""
    f32 = jnp.float32
    bf16 = jnp.bfloat16
    D = kp["bfin"].shape[1]
    xs = [a.astype(bf16).astype(f32) for a in (mil2, mil3, mil4, x4)]
    names = ("2", "3", "4", "x")
    ps = [x @ kp["wcat" + n].astype(f32) for x, n in zip(xs, names)]
    h = jnp.maximum(sum(pp[:, D:] for pp in ps) + kp["bfused"], 0.0)
    logits = h.astype(bf16).astype(f32) @ kp["wa2"].astype(f32) + kp["ba2"]
    attn = jax.nn.softmax(logits, axis=1)
    out = sum(attn[:, i:i + 1] * (ps[i][:, :D] + kp["bs" + names[i]])
              for i in range(4)) + kp["bfin"]
    return out


if __name__ == "__main__":
    feature_dim = 128   # module default
    batch = 32          # tb=16 -> 2-step batch grid (exercises pipelining)

    key = jax.random.PRNGKey(0)
    k_in, k_p = jax.random.split(key)
    k2, k3, k4, kx = jax.random.split(k_in, 4)

    mil2 = jax.random.normal(k2, (batch, feature_dim), jnp.float32)
    mil3 = jax.random.normal(k3, (batch, feature_dim), jnp.float32)
    mil4 = jax.random.normal(k4, (batch, feature_dim), jnp.float32)
    x4 = jax.random.normal(kx, (batch, feature_dim), jnp.float32)

    params = init_params(k_p, feature_dim)
    kparams = prepare_params(params)

    out = cross_stage_fusion(mil2, mil3, mil4, x4, kparams, tb=16)
    out = jax.block_until_ready(out)
    assert out.shape == (batch, feature_dim)
    out_f32 = out.astype(jnp.float32)

    # Check 1 (tight): same folded bf16 weights & bf16 activations as the kernel;
    # residuals are accumulation order, approx reciprocal, bf16 output rounding.
    ref_folded = reference_folded(mil2, mil3, mil4, x4, kparams)
    assert jnp.allclose(out_f32, ref_folded, atol=2e-2, rtol=2e-2), \
        "mismatch vs folded bf16-weight reference"

    # Check 2 (loose): exact f32 module semantics; tolerance covers bf16 operands.
    ref_f32 = reference(mil2, mil3, mil4, x4, params)
    assert jnp.allclose(out_f32, ref_f32, atol=1e-1, rtol=1e-1), \
        "mismatch vs f32 module reference"

    print("KERNEL_OK")
</pallas_src>

<mosaic_0001>
module attributes {stable_mosaic.version = 11 : i64} {
  func.func @cross_stage_fusion_kernel(%arg0: i32, %arg1: memref<16x128xbf16, #tpu.memory_space<vmem>>, %arg2: memref<16x128xbf16, #tpu.memory_space<vmem>>, %arg3: memref<16x128xbf16, #tpu.memory_space<vmem>>, %arg4: memref<16x128xbf16, #tpu.memory_space<vmem>>, %arg5: memref<128x640xbf16, #tpu.memory_space<vmem>>, %arg6: memref<128x640xbf16, #tpu.memory_space<vmem>>, %arg7: memref<128x640xbf16, #tpu.memory_space<vmem>>, %arg8: memref<128x640xbf16, #tpu.memory_space<vmem>>, %arg9: memref<1x128xf32, #tpu.memory_space<vmem>>, %arg10: memref<1x128xf32, #tpu.memory_space<vmem>>, %arg11: memref<1x128xf32, #tpu.memory_space<vmem>>, %arg12: memref<1x128xf32, #tpu.memory_space<vmem>>, %arg13: memref<1x512xf32, #tpu.memory_space<vmem>>, %arg14: memref<512x4xbf16, #tpu.memory_space<vmem>>, %arg15: memref<1x4xf32, #tpu.memory_space<vmem>>, %arg16: memref<1x128xf32, #tpu.memory_space<vmem>>, %arg17: memref<16x128xbf16, #tpu.memory_space<vmem>>) attributes {dimension_semantics = [#tpu.dimension_semantics<arbitrary>], iteration_bounds = array<i64: 2>, scalar_prefetch = 0 : i64, scratch_operands = 0 : i64, tpu.core_type = #tpu.core_type<tc>, window_params = [{transform_indices = @transform_0, window_bounds = array<i64: 16, 128>}, {transform_indices = @transform_1, window_bounds = array<i64: 16, 128>}, {transform_indices = @transform_2, window_bounds = array<i64: 16, 128>}, {transform_indices = @transform_3, window_bounds = array<i64: 16, 128>}, {pipeline_mode = #tpu.pipeline_mode<synchronous>, transform_indices = @transform_4, window_bounds = array<i64: 128, 640>}, {pipeline_mode = #tpu.pipeline_mode<synchronous>, transform_indices = @transform_5, window_bounds = array<i64: 128, 640>}, {pipeline_mode = #tpu.pipeline_mode<synchronous>, transform_indices = @transform_6, window_bounds = array<i64: 128, 640>}, {pipeline_mode = #tpu.pipeline_mode<synchronous>, transform_indices = @transform_7, window_bounds = array<i64: 128, 640>}, {pipeline_mode = #tpu.pipeline_mode<synchronous>, transform_indices = @transform_8, window_bounds = array<i64: 1, 128>}, {pipeline_mode = #tpu.pipeline_mode<synchronous>, transform_indices = @transform_9, window_bounds = array<i64: 1, 128>}, {pipeline_mode = #tpu.pipeline_mode<synchronous>, transform_indices = @transform_10, window_bounds = array<i64: 1, 128>}, {pipeline_mode = #tpu.pipeline_mode<synchronous>, transform_indices = @transform_11, window_bounds = array<i64: 1, 128>}, {pipeline_mode = #tpu.pipeline_mode<synchronous>, transform_indices = @transform_12, window_bounds = array<i64: 1, 512>}, {pipeline_mode = #tpu.pipeline_mode<synchronous>, transform_indices = @transform_13, window_bounds = array<i64: 512, 4>}, {pipeline_mode = #tpu.pipeline_mode<synchronous>, transform_indices = @transform_14, window_bounds = array<i64: 1, 4>}, {pipeline_mode = #tpu.pipeline_mode<synchronous>, transform_indices = @transform_15, window_bounds = array<i64: 1, 128>}, {transform_indices = @transform_16, window_bounds = array<i64: 16, 128>}]} {
    %c0 = arith.constant 0 : index
    %c0_0 = arith.constant 0 : index
    %0 = vector.load %arg1[%c0, %c0_0] : memref<16x128xbf16, #tpu.memory_space<vmem>>, vector<16x128xbf16>
    %c0_1 = arith.constant 0 : index
    %c0_2 = arith.constant 0 : index
    %1 = vector.load %arg5[%c0_1, %c0_2] : memref<128x640xbf16, #tpu.memory_space<vmem>>, vector<128x640xbf16>
    %cst = arith.constant dense<0.000000e+00> : vector<16x640xf32>
    %2 = tpu.matmul %0, %1, %cst {dimension_numbers = #tpu.dot_dimension_numbers<[1], [0], [0], [1], [0, 0, 1, 1], [], []>} : vector<16x128xbf16>, vector<128x640xbf16>, vector<16x640xf32> -> vector<16x640xf32>
    %c0_3 = arith.constant 0 : index
    %c0_4 = arith.constant 0 : index
    %3 = vector.load %arg2[%c0_3, %c0_4] : memref<16x128xbf16, #tpu.memory_space<vmem>>, vector<16x128xbf16>
    %c0_5 = arith.constant 0 : index
    %c0_6 = arith.constant 0 : index
    %4 = vector.load %arg6[%c0_5, %c0_6] : memref<128x640xbf16, #tpu.memory_space<vmem>>, vector<128x640xbf16>
    %cst_7 = arith.constant dense<0.000000e+00> : vector<16x640xf32>
    %5 = tpu.matmul %3, %4, %cst_7 {dimension_numbers = #tpu.dot_dimension_numbers<[1], [0], [0], [1], [0, 0, 1, 1], [], []>} : vector<16x128xbf16>, vector<128x640xbf16>, vector<16x640xf32> -> vector<16x640xf32>
    %c0_8 = arith.constant 0 : index
    %c0_9 = arith.constant 0 : index
    %6 = vector.load %arg3[%c0_8, %c0_9] : memref<16x128xbf16, #tpu.memory_space<vmem>>, vector<16x128xbf16>
    %c0_10 = arith.constant 0 : index
    %c0_11 = arith.constant 0 : index
    %7 = vector.load %arg7[%c0_10, %c0_11] : memref<128x640xbf16, #tpu.memory_space<vmem>>, vector<128x640xbf16>
    %cst_12 = arith.constant dense<0.000000e+00> : vector<16x640xf32>
    %8 = tpu.matmul %6, %7, %cst_12 {dimension_numbers = #tpu.dot_dimension_numbers<[1], [0], [0], [1], [0, 0, 1, 1], [], []>} : vector<16x128xbf16>, vector<128x640xbf16>, vector<16x640xf32> -> vector<16x640xf32>
    %c0_13 = arith.constant 0 : index
    %c0_14 = arith.constant 0 : index
    %9 = vector.load %arg4[%c0_13, %c0_14] : memref<16x128xbf16, #tpu.memory_space<vmem>>, vector<16x128xbf16>
    %c0_15 = arith.constant 0 : index
    %c0_16 = arith.constant 0 : index
    %10 = vector.load %arg8[%c0_15, %c0_16] : memref<128x640xbf16, #tpu.memory_space<vmem>>, vector<128x640xbf16>
    %cst_17 = arith.constant dense<0.000000e+00> : vector<16x640xf32>
    %11 = tpu.matmul %9, %10, %cst_17 {dimension_numbers = #tpu.dot_dimension_numbers<[1], [0], [0], [1], [0, 0, 1, 1], [], []>} : vector<16x128xbf16>, vector<128x640xbf16>, vector<16x640xf32> -> vector<16x640xf32>
    %12 = vector.extract_strided_slice %2 {offsets = [0, 128], sizes = [16, 512], strides = [1, 1]} : vector<16x640xf32> to vector<16x512xf32>
    %13 = vector.extract_strided_slice %5 {offsets = [0, 128], sizes = [16, 512], strides = [1, 1]} : vector<16x640xf32> to vector<16x512xf32>
    %14 = arith.addf %12, %13 : vector<16x512xf32>
    %15 = vector.extract_strided_slice %8 {offsets = [0, 128], sizes = [16, 512], strides = [1, 1]} : vector<16x640xf32> to vector<16x512xf32>
    %16 = arith.addf %14, %15 : vector<16x512xf32>
    %17 = vector.extract_strided_slice %11 {offsets = [0, 128], sizes = [16, 512], strides = [1, 1]} : vector<16x640xf32> to vector<16x512xf32>
    %18 = arith.addf %16, %17 : vector<16x512xf32>
    %c0_18 = arith.constant 0 : index
    %c0_19 = arith.constant 0 : index
    %19 = vector.load %arg13[%c0_18, %c0_19] : memref<1x512xf32, #tpu.memory_space<vmem>>, vector<1x512xf32>
    %20 = vector.broadcast %19 : vector<1x512xf32> to vector<16x512xf32>
    %21 = arith.addf %18, %20 : vector<16x512xf32>
    %cst_20 = arith.constant 0.000000e+00 : f32
    %22 = vector.broadcast %cst_20 : f32 to vector<16x512xf32>
    %23 = arith.maximumf %21, %22 : vector<16x512xf32>
    %24 = arith.truncf %23 : vector<16x512xf32> to vector<16x512xbf16>
    %c0_21 = arith.constant 0 : index
    %c0_22 = arith.constant 0 : index
    %25 = vector.load %arg14[%c0_21, %c0_22] : memref<512x4xbf16, #tpu.memory_space<vmem>>, vector<512x4xbf16>
    %cst_23 = arith.constant dense<0.000000e+00> : vector<16x4xf32>
    %26 = tpu.matmul %24, %25, %cst_23 {dimension_numbers = #tpu.dot_dimension_numbers<[1], [0], [0], [1], [0, 0, 1, 1], [], []>} : vector<16x512xbf16>, vector<512x4xbf16>, vector<16x4xf32> -> vector<16x4xf32>
    %c0_24 = arith.constant 0 : index
    %c0_25 = arith.constant 0 : index
    %27 = vector.load %arg15[%c0_24, %c0_25] : memref<1x4xf32, #tpu.memory_space<vmem>>, vector<1x4xf32>
    %28 = vector.broadcast %27 : vector<1x4xf32> to vector<16x4xf32>
    %29 = arith.addf %26, %28 : vector<16x4xf32>
    %cst_26 = arith.constant dense<0xFF800000> : vector<16xf32>
    %30 = vector.multi_reduction <maximumf>, %29, %cst_26 [1] : vector<16x4xf32> to vector<16xf32>
    %31 = vector.shape_cast %30 : vector<16xf32> to vector<16x1xf32>
    %32 = vector.broadcast %31 : vector<16x1xf32> to vector<16x4xf32>
    %33 = arith.subf %29, %32 : vector<16x4xf32>
    %34 = math.exp %33 : vector<16x4xf32>
    %cst_27 = arith.constant dense<0.000000e+00> : vector<16xf32>
    %35 = vector.multi_reduction <add>, %34, %cst_27 [1] : vector<16x4xf32> to vector<16xf32>
    %36 = vector.shape_cast %35 : vector<16xf32> to vector<16x1xf32>
    %37 = tpu.reciprocal %36 {approx = true} : vector<16x1xf32> -> vector<16x1xf32>
    %38 = vector.broadcast %37 : vector<16x1xf32> to vector<16x4xf32>
    %39 = arith.mulf %34, %38 : vector<16x4xf32>
    %40 = vector.extract_strided_slice %39 {offsets = [0, 0], sizes = [16, 1], strides = [1, 1]} : vector<16x4xf32> to vector<16x1xf32>
    %41 = vector.extract_strided_slice %2 {offsets = [0, 0], sizes = [16, 128], strides = [1, 1]} : vector<16x640xf32> to vector<16x128xf32>
    %c0_28 = arith.constant 0 : index
    %c0_29 = arith.constant 0 : index
    %42 = vector.load %arg9[%c0_28, %c0_29] : memref<1x128xf32, #tpu.memory_space<vmem>>, vector<1x128xf32>
    %43 = vector.broadcast %42 : vector<1x128xf32> to vector<16x128xf32>
    %44 = arith.addf %41, %43 : vector<16x128xf32>
    %45 = vector.broadcast %40 : vector<16x1xf32> to vector<16x128xf32>
    %46 = arith.mulf %45, %44 : vector<16x128xf32>
    %47 = vector.extract_strided_slice %39 {offsets = [0, 1], sizes = [16, 1], strides = [1, 1]} : vector<16x4xf32> to vector<16x1xf32>
    %48 = vector.extract_strided_slice %5 {offsets = [0, 0], sizes = [16, 128], strides = [1, 1]} : vector<16x640xf32> to vector<16x128xf32>
    %c0_30 = arith.constant 0 : index
    %c0_31 = arith.constant 0 : index
    %49 = vector.load %arg10[%c0_30, %c0_31] : memref<1x128xf32, #tpu.memory_space<vmem>>, vector<1x128xf32>
    %50 = vector.broadcast %49 : vector<1x128xf32> to vector<16x128xf32>
    %51 = arith.addf %48, %50 : vector<16x128xf32>
    %52 = vector.broadcast %47 : vector<16x1xf32> to vector<16x128xf32>
    %53 = arith.mulf %52, %51 : vector<16x128xf32>
    %54 = arith.addf %46, %53 : vector<16x128xf32>
    %55 = vector.extract_strided_slice %39 {offsets = [0, 2], sizes = [16, 1], strides = [1, 1]} : vector<16x4xf32> to vector<16x1xf32>
    %56 = vector.extract_strided_slice %8 {offsets = [0, 0], sizes = [16, 128], strides = [1, 1]} : vector<16x640xf32> to vector<16x128xf32>
    %c0_32 = arith.constant 0 : index
    %c0_33 = arith.constant 0 : index
    %57 = vector.load %arg11[%c0_32, %c0_33] : memref<1x128xf32, #tpu.memory_space<vmem>>, vector<1x128xf32>
    %58 = vector.broadcast %57 : vector<1x128xf32> to vector<16x128xf32>
    %59 = arith.addf %56, %58 : vector<16x128xf32>
    %60 = vector.broadcast %55 : vector<16x1xf32> to vector<16x128xf32>
    %61 = arith.mulf %60, %59 : vector<16x128xf32>
    %62 = arith.addf %54, %61 : vector<16x128xf32>
    %63 = vector.extract_strided_slice %39 {offsets = [0, 3], sizes = [16, 1], strides = [1, 1]} : vector<16x4xf32> to vector<16x1xf32>
    %64 = vector.extract_strided_slice %11 {offsets = [0, 0], sizes = [16, 128], strides = [1, 1]} : vector<16x640xf32> to vector<16x128xf32>
    %c0_34 = arith.constant 0 : index
    %c0_35 = arith.constant 0 : index
    %65 = vector.load %arg12[%c0_34, %c0_35] : memref<1x128xf32, #tpu.memory_space<vmem>>, vector<1x128xf32>
    %66 = vector.broadcast %65 : vector<1x128xf32> to vector<16x128xf32>
    %67 = arith.addf %64, %66 : vector<16x128xf32>
    %68 = vector.broadcast %63 : vector<16x1xf32> to vector<16x128xf32>
    %69 = arith.mulf %68, %67 : vector<16x128xf32>
    %70 = arith.addf %62, %69 : vector<16x128xf32>
    %c0_36 = arith.constant 0 : index
    %c0_37 = arith.constant 0 : index
    %71 = vector.load %arg16[%c0_36, %c0_37] : memref<1x128xf32, #tpu.memory_space<vmem>>, vector<1x128xf32>
    %72 = vector.broadcast %71 : vector<1x128xf32> to vector<16x128xf32>
    %73 = arith.addf %70, %72 : vector<16x128xf32>
    %74 = arith.truncf %73 : vector<16x128xf32> to vector<16x128xbf16>
    %c0_38 = arith.constant 0 : index
    %c0_39 = arith.constant 0 : index
    %75 = vector.load %arg17[%c0_38, %c0_39] : memref<16x128xbf16, #tpu.memory_space<vmem>>, vector<16x128xbf16>
    tpu.vector_store %arg17[%c0_38, %c0_39], %74 {strides = array<i32>} : memref<16x128xbf16, #tpu.memory_space<vmem>>, vector<16x128xbf16>,
    return
  }
  func.func @transform_0(%arg0: i32) -> (i32, i32) {
    %c0_i32 = arith.constant 0 : i32
    %c0_i32_0 = arith.constant 0 : i32
    return %arg0, %c0_i32 : i32, i32
  }
  func.func @transform_1(%arg0: i32) -> (i32, i32) {
    %c0_i32 = arith.constant 0 : i32
    %c0_i32_0 = arith.constant 0 : i32
    return %arg0, %c0_i32 : i32, i32
  }
  func.func @transform_2(%arg0: i32) -> (i32, i32) {
    %c0_i32 = arith.constant 0 : i32
    %c0_i32_0 = arith.constant 0 : i32
    return %arg0, %c0_i32 : i32, i32
  }
  func.func @transform_3(%arg0: i32) -> (i32, i32) {
    %c0_i32 = arith.constant 0 : i32
    %c0_i32_0 = arith.constant 0 : i32
    return %arg0, %c0_i32 : i32, i32
  }
  func.func @transform_4(%arg0: i32) -> (i32, i32) {
    %c0_i32 = arith.constant 0 : i32
    %c0_i32_0 = arith.constant 0 : i32
    %c0_i32_1 = arith.constant 0 : i32
    return %c0_i32, %c0_i32_0 : i32, i32
  }
  func.func @transform_5(%arg0: i32) -> (i32, i32) {
    %c0_i32 = arith.constant 0 : i32
    %c0_i32_0 = arith.constant 0 : i32
    %c0_i32_1 = arith.constant 0 : i32
    return %c0_i32, %c0_i32_0 : i32, i32
  }
  func.func @transform_6(%arg0: i32) -> (i32, i32) {
    %c0_i32 = arith.constant 0 : i32
    %c0_i32_0 = arith.constant 0 : i32
    %c0_i32_1 = arith.constant 0 : i32
    return %c0_i32, %c0_i32_0 : i32, i32
  }
  func.func @transform_7(%arg0: i32) -> (i32, i32) {
    %c0_i32 = arith.constant 0 : i32
    %c0_i32_0 = arith.constant 0 : i32
    %c0_i32_1 = arith.constant 0 : i32
    return %c0_i32, %c0_i32_0 : i32, i32
  }
  func.func @transform_8(%arg0: i32) -> (i32, i32) {
    %c0_i32 = arith.constant 0 : i32
    %c0_i32_0 = arith.constant 0 : i32
    %c0_i32_1 = arith.constant 0 : i32
    return %c0_i32, %c0_i32_0 : i32, i32
  }
  func.func @transform_9(%arg0: i32) -> (i32, i32) {
    %c0_i32 = arith.constant 0 : i32
    %c0_i32_0 = arith.constant 0 : i32
    %c0_i32_1 = arith.constant 0 : i32
    return %c0_i32, %c0_i32_0 : i32, i32
  }
  func.func @transform_10(%arg0: i32) -> (i32, i32) {
    %c0_i32 = arith.constant 0 : i32
    %c0_i32_0 = arith.constant 0 : i32
    %c0_i32_1 = arith.constant 0 : i32
    return %c0_i32, %c0_i32_0 : i32, i32
  }
  func.func @transform_11(%arg0: i32) -> (i32, i32) {
    %c0_i32 = arith.constant 0 : i32
    %c0_i32_0 = arith.constant 0 : i32
    %c0_i32_1 = arith.constant 0 : i32
    return %c0_i32, %c0_i32_0 : i32, i32
  }
  func.func @transform_12(%arg0: i32) -> (i32, i32) {
    %c0_i32 = arith.constant 0 : i32
    %c0_i32_0 = arith.constant 0 : i32
    %c0_i32_1 = arith.constant 0 : i32
    return %c0_i32, %c0_i32_0 : i32, i32
  }
  func.func @transform_13(%arg0: i32) -> (i32, i32) {
    %c0_i32 = arith.constant 0 : i32
    %c0_i32_0 = arith.constant 0 : i32
    %c0_i32_1 = arith.constant 0 : i32
    return %c0_i32, %c0_i32_0 : i32, i32
  }
  func.func @transform_14(%arg0: i32) -> (i32, i32) {
    %c0_i32 = arith.constant 0 : i32
    %c0_i32_0 = arith.constant 0 : i32
    %c0_i32_1 = arith.constant 0 : i32
    return %c0_i32, %c0_i32_0 : i32, i32
  }
  func.func @transform_15(%arg0: i32) -> (i32, i32) {
    %c0_i32 = arith.constant 0 : i32
    %c0_i32_0 = arith.constant 0 : i32
    %c0_i32_1 = arith.constant 0 : i32
    return %c0_i32, %c0_i32_0 : i32, i32
  }
  func.func @transform_16(%arg0: i32) -> (i32, i32) {
    %c0_i32 = arith.constant 0 : i32
    %c0_i32_0 = arith.constant 0 : i32
    return %arg0, %c0_i32 : i32, i32
  }
}

</mosaic_0001>

<bundles_post_ra>
// kernel: tpu_custom_call.1
= control target key start
LH: loop header
LB: loop body
LE: loop exit
PB: predicated region body
PF: predicated region fallthrough
CT: control target
= control target key end

     0   :  { %s4414_s0 = inlined_call_operand.vmem [shape: bf16[32,128], index: 0, kind: input, shape index: {}]   ;;  %s4415_s1 = inlined_call_operand.vmem [shape: bf16[32,128], index: 1, kind: input, shape index: {}]   ;;  %s4416_s2 = inlined_call_operand.vmem [shape: bf16[32,128], index: 2, kind: input, shape index: {}]   ;;  %s4417_s3 = inlined_call_operand.vmem [shape: bf16[32,128], index: 3, kind: input, shape index: {}]   ;;  %s4418_s4 = inlined_call_operand.hbm [shape: bf16[128,640], index: 4, kind: input, shape index: {}]   ;;  %s4419_s5 = inlined_call_operand.hbm [shape: bf16[128,640], index: 5, kind: input, shape index: {}]   ;;  %s4420_s6 = inlined_call_operand.hbm [shape: bf16[128,640], index: 6, kind: input, shape index: {}]   ;;  %s4421_s7 = inlined_call_operand.hbm [shape: bf16[128,640], index: 7, kind: input, shape index: {}]   ;;  %s4422_s8 = inlined_call_operand.vmem [shape: f32[1,128], index: 8, kind: input, shape index: {}]   ;;  %s4423_s9 = inlined_call_operand.vmem [shape: f32[1,128], index: 9, kind: input, shape index: {}]   ;;  %s4424_s10 = inlined_call_operand.vmem [shape: f32[1,128], index: 10, kind: input, shape index: {}]   ;;  %s4425_s11 = inlined_call_operand.vmem [shape: f32[1,128], index: 11, kind: input, shape index: {}]   ;;  %s4426_s12 = inlined_call_operand.vmem [shape: f32[1,512], index: 12, kind: input, shape index: {}]   ;;  %s4427_s13 = inlined_call_operand.vmem [shape: bf16[512,4], index: 13, kind: input, shape index: {}]   ;;  %s4428_s14 = inlined_call_operand.vmem [shape: f32[1,4], index: 14, kind: input, shape index: {}]   ;;  %s4429_s15 = inlined_call_operand.vmem [shape: f32[1,128], index: 15, kind: input, shape index: {}]   ;;  %s4430_s16 = inlined_call_operand.hbm [shape: bf16[32,128], index: 16, kind: output, shape index: {}]  }
   0x1   :  { %4440 = sst [smem:[#allocation22_spill]] %s4414_s0 }
   0x2   :  { %4441 = sst [smem:[#allocation23_spill]] %s4418_s4 }
   0x3   :  { %4442 = sst [smem:[#allocation24_spill]] %s4419_s5 }
   0x4   :  { %4443 = sst [smem:[#allocation25_spill]] %s4429_s15 }
   0x5   :  { %4444 = sst [smem:[#allocation26_spill]] %s4430_s16 }
   0x6   :  { %21 = vsyncpa [#allocation3], 0 }
   0x7   :  { %22 = vsyncpa [#allocation6], 0 }
   0x8   :  { %23 = vsyncpa [#allocation9], 0 }
   0x9   :  { %24 = vsyncpa [#allocation4], 0 }
   0xa   :  { %26 = vsyncpa [#allocation4 + $0x1], 0  ;;  %s4037_s21 = smov 0   ;;  %s4039_s22 = smov 0  }
   0xb   :  { %s4041_s23 = smov 0   ;;  %s4043_s24 = smov 0  }
   0xc LB: > { %4445 = sst [smem:[#allocation15_spill]] %s3926_s21  ;;  %s4058_s25 = sadd.s32 4294967295, %s3938_s24   ;;  %s3938_s24 = sphi %s4043_s24, %s4466_s24   ;;  %s3934_s23 = sphi %s4041_s23, %s4471_s23   ;;  %s3930_s22 = sphi %s4039_s22, %s4470_s22   ;;  %s3926_s21 = sphi %s4037_s21, %s4469_s21  }
   0xd   : > { %4446 = sst [smem:[#allocation16_spill]] %s3934_s23  ;;  %s2622_s26 = sadd.s32 4294967294, %s3938_s24  }
   0xe   : > { %4447 = sst [smem:[#allocation17_spill]] %s3938_s24  ;;  %s4062_s27 = sadd.s32 1, %s3938_s24  }
   0xf   : > { %4448 = sst [smem:[#allocation18_spill]] %s4062_s27  ;;  %s395_s28 = sadd.s32 1, %s3934_s23 }
  0x10   : > { %s392_s29 = ssub.s32 %s3938_s24, %s4062_s27  ;;  %p405_p0 = scmp.ne.s32.totalorder %s3934_s23, %s3930_s22 }
  0x11   : > { %p393_p1 = scmp.eq.s32.totalorder %s392_s29, 0  ;;  %p406_p2 = scmp.eq.s32.totalorder %s4058_s25, 1 }
  0x12   : > { %p411_p3 = scmp.ne.s32.totalorder %s3930_s22, %s3926_s21  ;;  %p412_p4 = scmp.eq.s32.totalorder %s2622_s26, 1 }
  0x13   : > { %s4073_s30 = scalar_select %p393_p1, %s3934_s23, %s395_s28  }
  0x14   : > { %p4075_p5 = por %p406_p2, %p405_p0  ;;  %p4079_p6 = por %p412_p4, %p411_p3 }
  0x15   : > { %4449 = sst [smem:[#allocation19_spill]] %s4073_s30  ;;  %p2623_p7 = scmp.ge.s32.totalorder %s3938_s24, 1 }
  0x16   : > { %s4450_s0 = scalar_select %p4075_p5, 1, 0 }
  0x17   : > { %s4452_s17 = scalar_select %p4079_p6, 1, 0 }
  0x18   : > { %4451 = sst [smem:[#allocation20_spill]] %s4450_s0  ;;  %p419_p8 = scmp.lt.s32.totalorder %s3938_s24, 3 }
  0x19   : > { %4453 = sst [smem:[#allocation21_spill]] %s4452_s17  ;;  %p3669_p9 = scmp.eq.s32.totalorder %s4058_s25, 0 }
  0x1a   : > { %p4086_p10 = pnand %p2623_p7, %p419_p8  ;;  %s4455_s5 = sld [smem:[#allocation24_spill]] }
  0x1b   : > { %s4456_s4 = sld [smem:[#allocation23_spill]]  ;;  %s3940_s27 = smov [#allocation5]  }
  0x1c   : > { %p3652_p11 = pneg %p4086_p10  ;;  %s446_s17 = sshll.u32 %s3940_s27, 4  ;;  %s447_s17 = int_to_ptr.vmem [resolvable:$true] %s446_s17 }
  0x1d   : > { %s3941_s19 = smov 320   ;;  %s3942_s20 = smov 20  }
  0x1e   : > { %p4100_p12 = pnand %p3669_p9, %p3652_p11  ;;  %s458_s21 = sshll.u32 %s4420_s6, 4  ;;  %s459_s21 = int_to_ptr.hbm [resolvable:$true] %s458_s21 }
  0x1f   : > { %s472_s0 = sshll.u32 %s4421_s7, 4  ;;  %s3944_s15 = smov [#allocation7]   ;;  %s473_s0 = int_to_ptr.hbm [resolvable:$true] %s472_s0 }
  0x20   : > { %s444_s26 = sshll.u32 %s4455_s5, 4  ;;  %s3943_s5 = smov [#allocation2]   ;;  %s445_s26 = int_to_ptr.hbm [resolvable:$true] %s444_s26 }
  0x21   : > { %s430_s30 = sshll.u32 %s4456_s4, 4  ;;  %s432_s28 = sshll.u32 %s3943_s5, 4  ;;  %s431_s30 = int_to_ptr.hbm [resolvable:$true] %s430_s30  ;;  %s433_s28 = int_to_ptr.vmem [resolvable:$true] %s432_s28 }
  0x22   : > { %3658 = dma.hbm_to_vmem [thread:$0]  (!%p4100_p12), %s445_s26, 5120, %s447_s17, [#allocation6], %s3941_s19, %s3941_s19, %s3942_s20  }
  0x23   : > { %3655 = dma.hbm_to_vmem [thread:$0]  (!%p4100_p12), %s431_s30, 5120, %s433_s28, [#allocation3], %s3941_s19, %s3941_s19, %s3942_s20  }
  0x24   : > { %s460_s16 = sshll.u32 %s3944_s15, 4  ;;  %s3945_s17 = smov [#allocation8]   ;;  %s461_s16 = int_to_ptr.vmem [resolvable:$true] %s460_s16 }
  0x25   : > { %3661 = dma.hbm_to_vmem [thread:$0]  (!%p4100_p12), %s459_s21, 5120, %s461_s16, [#allocation6], %s3941_s19, %s3941_s19, %s3942_s20  }
  0x26   : > { %s474_s5 = sshll.u32 %s3945_s17, 4  ;;  %550 = sbr.rel (%p4086_p10) target bundleno = 897 (0x381), region = 84  ;;  %s475_s5 = int_to_ptr.vmem [resolvable:$true] %s474_s5 }
  0x27   : > { %3664 = dma.hbm_to_vmem [thread:$0]  (!%p4100_p12), %s473_s0, 5120, %s475_s5, [#allocation9], %s3941_s19, %s3941_s19, %s3942_s20  }
  0x2b   : > { %3909 = dma.done.wait (%p3669_p9), [#allocation3], 5120  }
  0x2c   : > { %3911 = vsyncadd (%p3669_p9), [#allocation3], 4294962176 }
  0x2d   : > { %3913 = dma.done.wait (%p3669_p9), [#allocation6], 10240  }
  0x2e   : > { %3915 = vsyncadd (%p3669_p9), [#allocation6], 4294957056 }
  0x2f   : > { %3917 = dma.done.wait (%p3669_p9), [#allocation9], 5120  }
  0x30   : > { %3919 = vsyncadd (%p3669_p9), [#allocation9], 4294962176  ;;  %v2789_v0 = vld [vmem:[#allocation2 + $0x118] sm:$0xf]  ;;  %v3470_v1 = vld [vmem:[#allocation2 + $0x128] sm:$0xf0] }
  0x31   : > { %v3468_v2 = vld [vmem:[#allocation2 + $0x11c] sm:$0xf]  ;;  %v2790_v3 = vor.u32 %v3470_v1, %v2789_v0  ;;  %v2791_v4 = vld [vmem:[#allocation2 + $0x12c] sm:$0xf0]  ;;  %v2797_v5 = vld [vmem:[#allocation2 + $0x120] sm:$0xf] }
  0x32   : > { %v3471_v6 = vld [vmem:[#allocation2 + $0x130] sm:$0xf0]  ;;  %v2794_v7 = vor.u32 %v3468_v2, %v2791_v4  ;;  %v3469_v9 = vld [vmem:[#allocation2 + $0x124] sm:$0xf]  ;;  %v2799_v10 = vld [vmem:[#allocation2 + $0x134] sm:$0xf0] }
  0x33   : > { %v2798_v8 = vor.u32 %v3471_v6, %v2797_v5  ;;  %v2769_v11 = vld [vmem:[#allocation2 + $0xf0] sm:$0xf]  ;;  %920 = vmatpush.bf16.msra.mxu0 %v2790_v3  ;;  %v2802_v12 = vor.u32 %v3469_v9, %v2799_v10  ;;  %v3465_v13 = vld [vmem:[#allocation2 + $0x100] sm:$0xf0]  ;;  %v3463_v14 = vld [vmem:[#allocation2 + $0xf4] sm:$0xf] }
  0x34   : > { %v2771_v15 = vld [vmem:[#allocation2 + $0x104] sm:$0xf0]  ;;  %934 = vmatpush.bf16.msra.mxu1 %v2794_v7  ;;  %v2770_v16 = vor.u32 %v3465_v13, %v2769_v11  ;;  %v2777_v18 = vld [vmem:[#allocation2 + $0xf8] sm:$0xf]  ;;  %v3466_v19 = vld [vmem:[#allocation2 + $0x108] sm:$0xf0] }
  0x35   : > { %948 = vmatpush.bf16.msra.mxu2 %v2798_v8  ;;  %v2774_v17 = vor.u32 %v3463_v14, %v2771_v15  ;;  %v3464_v20 = vld [vmem:[#allocation2 + $0xfc] sm:$0xf]  ;;  %962 = vmatpush.bf16.msra.mxu3 %v2802_v12  ;;  %v2778_v21 = vor.u32 %v3466_v19, %v2777_v18  ;;  %v2779_v22 = vld [vmem:[#allocation2 + $0x10c] sm:$0xf0]  ;;  %v2749_v23 = vld [vmem:[#allocation2 + $0xc8] sm:$0xf] }
  0x36   : > { %v3460_v24 = vld [vmem:[#allocation2 + $0xd8] sm:$0xf0]  ;;  %v2782_v25 = vor.u32 %v3464_v20, %v2779_v22  ;;  %v3458_v26 = vld [vmem:[#allocation2 + $0xcc] sm:$0xf]  ;;  %v2751_v27 = vld [vmem:[#allocation2 + $0xdc] sm:$0xf0] }
  0x37   : > { %v2757_v28 = vld [vmem:[#allocation2 + $0xd0] sm:$0xf]  ;;  %921 = vmatpush.bf16.msra.mxu0 %v2770_v16  ;;  %v2750_v29 = vor.u32 %v3460_v24, %v2749_v23  ;;  %v3461_v30 = vld [vmem:[#allocation2 + $0xe0] sm:$0xf0]  ;;  %v3459_v31 = vld [vmem:[#allocation2 + $0xd4] sm:$0xf]  ;;  %v2754_v33 = vor.u32 %v3458_v26, %v2751_v27 }
  0x38   : > { %v2759_v32 = vld [vmem:[#allocation2 + $0xe4] sm:$0xf0]  ;;  %935 = vmatpush.bf16.msra.mxu1 %v2774_v17  ;;  %v2758_v34 = vor.u32 %v3461_v30, %v2757_v28  ;;  %v2729_v35 = vld [vmem:[#allocation2 + $0xa0] sm:$0xf]  ;;  %v3455_v36 = vld [vmem:[#allocation2 + $0xb0] sm:$0xf0] }
  0x39   : > { %949 = vmatpush.bf16.msra.mxu2 %v2778_v21  ;;  %v3453_v37 = vld [vmem:[#allocation2 + $0xa4] sm:$0xf]  ;;  %963 = vmatpush.bf16.msra.mxu3 %v2782_v25  ;;  %v2762_v38 = vor.u32 %v3459_v31, %v2759_v32  ;;  %v2731_v39 = vld [vmem:[#allocation2 + $0xb4] sm:$0xf0]  ;;  %v2737_v40 = vld [vmem:[#allocation2 + $0xa8] sm:$0xf]  ;;  %v2730_v44 = vor.u32 %v3455_v36, %v2729_v35 }
  0x3a   : > { %v3456_v41 = vld [vmem:[#allocation2 + $0xb8] sm:$0xf0]  ;;  %v3454_v42 = vld [vmem:[#allocation2 + $0xac] sm:$0xf]  ;;  %v2739_v43 = vld [vmem:[#allocation2 + $0xbc] sm:$0xf0]  ;;  %v2734_v45 = vor.u32 %v3453_v37, %v2731_v39 }
  0x3b   : > { %922 = vmatpush.bf16.msra.mxu0 %v2750_v29  ;;  %s2635_s4 = sshll.u32 %s4058_s25, 1  ;;  %v2738_v46 = vor.u32 %v3456_v41, %v2737_v40  ;;  %v2709_v47 = vld [vmem:[#allocation2 + $0x78] sm:$0xf]  ;;  %v3450_v48 = vld [vmem:[#allocation2 + $0x88] sm:$0xf0]  ;;  %v2742_v50 = vor.u32 %v3454_v42, %v2739_v43  ;;  %s4459_s24 = sld [smem:[#allocation22_spill]] }
  0x3c   : > { %936 = vmatpush.bf16.msra.mxu1 %v2754_v33  ;;  %v3448_v49 = vld [vmem:[#allocation2 + $0x7c] sm:$0xf]  ;;  %v2711_v51 = vld [vmem:[#allocation2 + $0x8c] sm:$0xf0]  ;;  %v2717_v52 = vld [vmem:[#allocation2 + $0x80] sm:$0xf]  ;;  %v2710_v56 = vor.u32 %v3450_v48, %v2709_v47 }
  0x3d   : > { %950 = vmatpush.bf16.msra.mxu2 %v2758_v34  ;;  %964 = vmatpush.bf16.msra.mxu3 %v2762_v38  ;;  %v3451_v53 = vld [vmem:[#allocation2 + $0x90] sm:$0xf0]  ;;  %v3449_v54 = vld [vmem:[#allocation2 + $0x84] sm:$0xf]  ;;  %v2719_v55 = vld [vmem:[#allocation2 + $0x94] sm:$0xf0]  ;;  %v2714_v57 = vor.u32 %v3448_v49, %v2711_v51 }
  0x3e   : > { %p4135_p13 = scmp.lt.s32.totalorder %s2635_s4, 3  ;;  %v2718_v58 = vor.u32 %v3451_v53, %v2717_v52  ;;  %v2689_v59 = vld [vmem:[#allocation2 + $0x50] sm:$0xf]  ;;  %v3445_v60 = vld [vmem:[#allocation2 + $0x60] sm:$0xf0]  ;;  %v2722_v62 = vor.u32 %v3449_v54, %v2719_v55  ;;  %vm2362_vm0 = vcmask 31744  }
  0x3f   : > { %923 = vmatpush.bf16.msra.mxu0 %v2730_v44  ;;  %v3443_v61 = vld [vmem:[#allocation2 + $0x54] sm:$0xf]  ;;  %v2691_v63 = vld [vmem:[#allocation2 + $0x64] sm:$0xf0]  ;;  %v2697_v0 = vld [vmem:[#allocation2 + $0x58] sm:$0xf]  ;;  %v2690_v4 = vor.u32 %v3445_v60, %v2689_v59 }
  0x40   : > { %937 = vmatpush.bf16.msra.mxu1 %v2734_v45  ;;  %v3446_v1 = vld [vmem:[#allocation2 + $0x68] sm:$0xf0]  ;;  %v3444_v2 = vld [vmem:[#allocation2 + $0x5c] sm:$0xf]  ;;  %v2699_v3 = vld [vmem:[#allocation2 + $0x6c] sm:$0xf0]  ;;  %v2694_v5 = vor.u32 %v3443_v61, %v2691_v63 }
  0x41   : > { %951 = vmatpush.bf16.msra.mxu2 %v2738_v46  ;;  %965 = vmatpush.bf16.msra.mxu3 %v2742_v50  ;;  %s4473_s4 = smov (!%p4135_p13, %s2635_s4), 3  ;;  %v2698_v6 = vor.u32 %v3446_v1, %v2697_v0  ;;  %v2669_v7 = vld [vmem:[#allocation2 + $0x28] sm:$0xf]  ;;  %v3440_v8 = vld [vmem:[#allocation2 + $0x38] sm:$0xf0]  ;;  %v2702_v10 = vor.u32 %v3444_v2, %v2699_v3  ;;  %s628_s0 = sand.u32 1, %s3930_s22  }
  0x42   : > { %v3438_v9 = vld [vmem:[#allocation2 + $0x2c] sm:$0xf]  ;;  %v2671_v11 = vld [vmem:[#allocation2 + $0x3c] sm:$0xf0]  ;;  %v2677_v12 = vld [vmem:[#allocation2 + $0x30] sm:$0xf]  ;;  %v2670_v16 = vor.u32 %v3440_v8, %v2669_v7 }
  0x43   : > { %924 = vmatpush.bf16.msra.mxu0 %v2710_v56  ;;  %v3441_v13 = vld [vmem:[#allocation2 + $0x40] sm:$0xf0]  ;;  %v3439_v14 = vld [vmem:[#allocation2 + $0x34] sm:$0xf]  ;;  %v2679_v15 = vld [vmem:[#allocation2 + $0x44] sm:$0xf0]  ;;  %v2674_v19 = vor.u32 %v3438_v9, %v2671_v11 }
  0x44   : > { %938 = vmatpush.bf16.msra.mxu1 %v2714_v57  ;;  %v2649_v17 = vld [vmem:[#allocation2] sm:$0xf]  ;;  %v3435_v18 = vld [vmem:[#allocation2 + $0x10] sm:$0xf0]  ;;  %s4143_s16 = sshll.u32 %s4473_s4, 2  ;;  %v2678_v20 = vor.u32 %v3441_v13, %v2677_v12  ;;  %v2682_v24 = vor.u32 %v3439_v14, %v2679_v15  ;;  %s2634_s18 = sshll.u32 %s628_s0, 3 }
  0x45   : > { %952 = vmatpush.bf16.msra.mxu2 %v2718_v58  ;;  %966 = vmatpush.bf16.msra.mxu3 %v2722_v62  ;;  %v3433_v21 = vld [vmem:[#allocation2 + $0x4] sm:$0xf]  ;;  %v2651_v22 = vld [vmem:[#allocation2 + $0x14] sm:$0xf0]  ;;  %v2657_v23 = vld [vmem:[#allocation2 + $0x8] sm:$0xf]  ;;  %v2650_v31 = vor.u32 %v3435_v18, %v2649_v17  ;;  %s635_s30 = scalar_lea.vmem %s4459_s24, %s4143_s16  ;;  %s641_s26 = scalar_lea.vmem %s4415_s1, %s4143_s16 }
  0x46   : > { %v3436_v25 = vld [vmem:[#allocation2 + $0x18] sm:$0xf0]  ;;  %v3434_v26 = vld [vmem:[#allocation2 + $0xc] sm:$0xf]  ;;  %v2659_v27 = vld [vmem:[#allocation2 + $0x1c] sm:$0xf0]  ;;  %v2654_v35 = vor.u32 %v3433_v21, %v2651_v22  ;;  %s647_s28 = scalar_lea.vmem %s4416_s2, %s4143_s16  ;;  %s653_s17 = scalar_lea.vmem %s4417_s3, %s4143_s16 }
  0x47   : > { %925 = vmatpush.bf16.msra.mxu0 %v2690_v4  ;;  %v2805_v28 = vld [vmem:[#allocation2 + $0x128] sm:$0xf]  ;;  %v3472_v29 = vld [vmem:[#allocation2 + $0x138] sm:$0xf0]  ;;  %v2953_v30 = vld [vmem:[#allocation5 + $0x118] sm:$0xf]  ;;  %v2658_v36 = vor.u32 %v3436_v25, %v2657_v23  ;;  %v2662_v39 = vor.u32 %v3434_v26, %v2659_v27 }
  0x48   : > { %939 = vmatpush.bf16.msra.mxu1 %v2694_v5  ;;  %v3511_v32 = vld [vmem:[#allocation5 + $0x128] sm:$0xf0]  ;;  %v3509_v33 = vld [vmem:[#allocation5 + $0x11c] sm:$0xf]  ;;  %v2955_v34 = vld [vmem:[#allocation5 + $0x12c] sm:$0xf0]  ;;  %v2806_v40 = vor.u32 %v3472_v29, %v2805_v28 }
  0x49   : > { %953 = vmatpush.bf16.msra.mxu2 %v2698_v6  ;;  %967 = vmatpush.bf16.msra.mxu3 %v2702_v10  ;;  %v2961_v37 = vld [vmem:[#allocation5 + $0x120] sm:$0xf]  ;;  %v3512_v38 = vld [vmem:[#allocation5 + $0x130] sm:$0xf0]  ;;  %v2954_v41 = vor.u32 %v3511_v32, %v2953_v30  ;;  %v2958_v42 = vor.u32 %v3509_v33, %v2955_v34  ;;  %v2933_v45 = vld [vmem:[#allocation5 + $0xf0] sm:$0xf] }
  0x4a   : > { %v2785_v43 = vld [vmem:[#allocation2 + $0x100] sm:$0xf]  ;;  %v3467_v44 = vld [vmem:[#allocation2 + $0x110] sm:$0xf0]  ;;  %v2962_v46 = vor.u32 %v3512_v38, %v2961_v37  ;;  %v3506_v47 = vld [vmem:[#allocation5 + $0x100] sm:$0xf0] }
  0x4b   : > { %926 = vmatpush.bf16.msra.mxu0 %v2670_v16  ;;  %v3504_v48 = vld [vmem:[#allocation5 + $0xf4] sm:$0xf]  ;;  %v2935_v49 = vld [vmem:[#allocation5 + $0x104] sm:$0xf0]  ;;  %v2941_v50 = vld [vmem:[#allocation5 + $0xf8] sm:$0xf]  ;;  %v2786_v53 = vor.u32 %v3467_v44, %v2785_v43  ;;  %v2934_v54 = vor.u32 %v3506_v47, %v2933_v45 }
  0x4c   : > { %940 = vmatpush.bf16.msra.mxu1 %v2674_v19  ;;  %v3507_v51 = vld [vmem:[#allocation5 + $0x108] sm:$0xf0]  ;;  %v4149_v52 = vld [vmem:[%s635_s30] sm:$0xff]  ;;  %v2938_v55 = vor.u32 %v3504_v48, %v2935_v49  ;;  %v2765_v56 = vld [vmem:[#allocation2 + $0xd8] sm:$0xf]  ;;  %s4461_s5 = sld [smem:[#allocation25_spill]] }
  0x4d   : > { %954 = vmatpush.bf16.msra.mxu2 %v2678_v20  ;;  %968 = vmatpush.bf16.msra.mxu3 %v2682_v24  ;;  %v3462_v57 = vld [vmem:[#allocation2 + $0xe8] sm:$0xf0]  ;;  %v2913_v58 = vld [vmem:[#allocation5 + $0xc8] sm:$0xf]  ;;  %v2942_v59 = vor.u32 %v3507_v51, %v2941_v50  ;;  %v3501_v60 = vld [vmem:[#allocation5 + $0xd8] sm:$0xf0] }
  0x4e   : > { %v3499_v61 = vld [vmem:[#allocation5 + $0xcc] sm:$0xf]  ;;  %v2915_v62 = vld [vmem:[#allocation5 + $0xdc] sm:$0xf0]  ;;  %v2921_v63 = vld [vmem:[#allocation5 + $0xd0] sm:$0xf]  ;;  %v2766_v1 = vor.u32 %v3462_v57, %v2765_v56  ;;  %v2914_v2 = vor.u32 %v3501_v60, %v2913_v58 }
  0x4f   : > { %927 = vmatpush.bf16.msra.mxu0 %v2650_v31  ;;  %v3502_v0 = vld [vmem:[#allocation5 + $0xe0] sm:$0xf0]  ;;  %v2918_v3 = vor.u32 %v3499_v61, %v2915_v62  ;;  %v2745_v4 = vld [vmem:[#allocation2 + $0xb0] sm:$0xf]  ;;  %v2893_v6 = vld [vmem:[#allocation5 + $0xa0] sm:$0xf] }
  0x50   : > { %941 = vmatpush.bf16.msra.mxu1 %v2654_v35  ;;  %v3457_v5 = vld [vmem:[#allocation2 + $0xc0] sm:$0xf0]  ;;  %v2922_v7 = vor.u32 %v3502_v0, %v2921_v63  ;;  %v3496_v8 = vld [vmem:[#allocation5 + $0xb0] sm:$0xf0]  ;;  %v2895_v10 = vld [vmem:[#allocation5 + $0xb4] sm:$0xf0] }
  0x51   : > { %955 = vmatpush.bf16.msra.mxu2 %v2658_v36  ;;  %969 = vmatpush.bf16.msra.mxu3 %v2662_v39  ;;  %v3494_v9 = vld [vmem:[#allocation5 + $0xa4] sm:$0xf]  ;;  %v2901_v11 = vld [vmem:[#allocation5 + $0xa8] sm:$0xf]  ;;  %v3497_v12 = vld [vmem:[#allocation5 + $0xb8] sm:$0xf0]  ;;  %v2746_v13 = vor.u32 %v3457_v5, %v2745_v4  ;;  %v2894_v14 = vor.u32 %v3496_v8, %v2893_v6 }
  0x52   : > { %928 = vmatmul.bf16.vlgmr.msra.gmra.mxu0 %v4149_v52  ;;  %v2898_v15 = vor.u32 %v3494_v9, %v2895_v10  ;;  %v2725_v16 = vld [vmem:[#allocation2 + $0x88] sm:$0xf]  ;;  %v3452_v17 = vld [vmem:[#allocation2 + $0x98] sm:$0xf0]  ;;  %v2873_v18 = vld [vmem:[#allocation5 + $0x78] sm:$0xf]  ;;  %v2902_v19 = vor.u32 %v3497_v12, %v2901_v11 }
  0x53   : > { %976 = vmatpush.bf16.msrb.mxu0 %v2806_v40  ;;  %942 = vmatmul.bf16.vlgmr.msra.gmra.mxu1 %v4149_v52  ;;  %v3491_v20 = vld [vmem:[#allocation5 + $0x88] sm:$0xf0]  ;;  %v3489_v21 = vld [vmem:[#allocation5 + $0x7c] sm:$0xf]  ;;  %v2875_v22 = vld [vmem:[#allocation5 + $0x8c] sm:$0xf0]  ;;  %v2726_v25 = vor.u32 %v3452_v17, %v2725_v16 }
  0x54   : > { %1254 = vmatpush.bf16.msrb.mxu1 %v2954_v41  ;;  %956 = vmatmul.bf16.vlgmr.msra.gmra.mxu2 %v4149_v52  ;;  %v2881_v23 = vld [vmem:[#allocation5 + $0x80] sm:$0xf]  ;;  %v3492_v24 = vld [vmem:[#allocation5 + $0x90] sm:$0xf0]  ;;  %v2874_v26 = vor.u32 %v3491_v20, %v2873_v18  ;;  %v2878_v27 = vor.u32 %v3489_v21, %v2875_v22  ;;  %v2853_v30 = vld [vmem:[#allocation5 + $0x50] sm:$0xf] }
  0x55   : > { %1268 = vmatpush.bf16.msrb.mxu2 %v2958_v42  ;;  %1282 = vmatpush.bf16.msrb.mxu3 %v2962_v46  ;;  %v2705_v28 = vld [vmem:[#allocation2 + $0x60] sm:$0xf]  ;;  %v3447_v29 = vld [vmem:[#allocation2 + $0x70] sm:$0xf0]  ;;  %v2882_v31 = vor.u32 %v3492_v24, %v2881_v23  ;;  %v3486_v32 = vld [vmem:[#allocation5 + $0x60] sm:$0xf0] }
  0x56   : > { %970 = vmatmul.bf16.vlgmr.msra.gmra.mxu3 %v4149_v52  ;;  %v3484_v33 = vld [vmem:[#allocation5 + $0x54] sm:$0xf]  ;;  %v2855_v34 = vld [vmem:[#allocation5 + $0x64] sm:$0xf0]  ;;  %v2861_v35 = vld [vmem:[#allocation5 + $0x58] sm:$0xf]  ;;  %v2706_v37 = vor.u32 %v3447_v29, %v2705_v28  ;;  %v2854_v38 = vor.u32 %v3486_v32, %v2853_v30 }
  0x57   : > { %977 = vmatpush.bf16.msrb.mxu0 %v2786_v53  ;;  %v3487_v36 = vld [vmem:[#allocation5 + $0x68] sm:$0xf0]  ;;  %v2858_v39 = vor.u32 %v3484_v33, %v2855_v34  ;;  %v2685_v40 = vld [vmem:[#allocation2 + $0x38] sm:$0xf]  ;;  %v2833_v42 = vld [vmem:[#allocation5 + $0x28] sm:$0xf] }
  0x58   : > { %1255 = vmatpush.bf16.msrb.mxu1 %v2934_v54  ;;  %v3442_v41 = vld [vmem:[#allocation2 + $0x48] sm:$0xf0]  ;;  %v2862_v43 = vor.u32 %v3487_v36, %v2861_v35  ;;  %v3481_v44 = vld [vmem:[#allocation5 + $0x38] sm:$0xf0]  ;;  %v2835_v46 = vld [vmem:[#allocation5 + $0x3c] sm:$0xf0] }
  0x59   : > { %1269 = vmatpush.bf16.msrb.mxu2 %v2938_v55  ;;  %1283 = vmatpush.bf16.msrb.mxu3 %v2942_v59  ;;  %v3479_v45 = vld [vmem:[#allocation5 + $0x2c] sm:$0xf]  ;;  %v2841_v47 = vld [vmem:[#allocation5 + $0x30] sm:$0xf]  ;;  %v3482_v48 = vld [vmem:[#allocation5 + $0x40] sm:$0xf0]  ;;  %v2686_v49 = vor.u32 %v3442_v41, %v2685_v40  ;;  %v2834_v53 = vor.u32 %v3481_v44, %v2833_v42 }
  0x5a   : > { %v2665_v50 = vld [vmem:[#allocation2 + $0x10] sm:$0xf]  ;;  %v3437_v51 = vld [vmem:[#allocation2 + $0x20] sm:$0xf0]  ;;  %v2838_v54 = vor.u32 %v3479_v45, %v2835_v46  ;;  %v2813_v55 = vld [vmem:[#allocation5] sm:$0xf]  ;;  %v2842_v58 = vor.u32 %v3482_v48, %v2841_v47 }
  0x5b   : > { %978 = vmatpush.bf16.msrb.mxu0 %v2766_v1  ;;  %v3476_v56 = vld [vmem:[#allocation5 + $0x10] sm:$0xf0]  ;;  %v3474_v57 = vld [vmem:[#allocation5 + $0x4] sm:$0xf]  ;;  %v2815_v59 = vld [vmem:[#allocation5 + $0x14] sm:$0xf0]  ;;  %v2666_v1 = vor.u32 %v3437_v51, %v2665_v50 }
  0x5c   : > { %1256 = vmatpush.bf16.msrb.mxu1 %v2914_v2  ;;  %v2821_v60 = vld [vmem:[#allocation5 + $0x8] sm:$0xf]  ;;  %v3477_v61 = vld [vmem:[#allocation5 + $0x18] sm:$0xf0]  ;;  %v3510_v62 = vld [vmem:[#allocation5 + $0x124] sm:$0xf]  ;;  %v2814_v5 = vor.u32 %v3476_v56, %v2813_v55  ;;  %v2818_v6 = vor.u32 %v3474_v57, %v2815_v59 }
  0x5d   : > { %1270 = vmatpush.bf16.msrb.mxu2 %v2918_v3  ;;  %1284 = vmatpush.bf16.msrb.mxu3 %v2922_v7  ;;  %v2963_v63 = vld [vmem:[#allocation5 + $0x134] sm:$0xf0]  ;;  %v2969_v0 = vld [vmem:[#allocation5 + $0x128] sm:$0xf]  ;;  %v3513_v2 = vld [vmem:[#allocation5 + $0x138] sm:$0xf0]  ;;  %v2822_v9 = vor.u32 %v3477_v61, %v2821_v60 }
  0x5e   : > { %v3117_v3 = vld [vmem:[#allocation7 + $0x118] sm:$0xf]  ;;  %v3552_v4 = vld [vmem:[#allocation7 + $0x128] sm:$0xf0]  ;;  %v3550_v7 = vld [vmem:[#allocation7 + $0x11c] sm:$0xf]  ;;  %v2966_v10 = vor.u32 %v3510_v62, %v2963_v63  ;;  %v2970_v12 = vor.u32 %v3513_v2, %v2969_v0 }
  0x5f   : > { %979 = vmatpush.bf16.msrb.mxu0 %v2746_v13  ;;  %v3119_v8 = vld [vmem:[#allocation7 + $0x12c] sm:$0xf0]  ;;  %v4159_v11 = vld [vmem:[%s641_s26] sm:$0xff]  ;;  %v3118_v13 = vor.u32 %v3552_v4, %v3117_v3  ;;  %v3508_v18 = vld [vmem:[#allocation5 + $0x110] sm:$0xf0]  ;;  %s3628_s26 = sshll.u32 %s4058_s25, 3 }
  0x60   : > { %1257 = vmatpush.bf16.msrb.mxu1 %v2894_v14  ;;  %v3505_v14 = vld [vmem:[#allocation5 + $0xfc] sm:$0xf]  ;;  %v2949_v16 = vld [vmem:[#allocation5 + $0x100] sm:$0xf]  ;;  %v3122_v17 = vor.u32 %v3550_v7, %v3119_v8  ;;  %v3547_v20 = vld [vmem:[#allocation7 + $0x100] sm:$0xf0] }
  0x61   : > { %1271 = vmatpush.bf16.msrb.mxu2 %v2898_v15  ;;  %1285 = vmatpush.bf16.msrb.mxu3 %v2902_v19  ;;  %v2943_v15 = vld [vmem:[#allocation5 + $0x10c] sm:$0xf0]  ;;  %v3545_v21 = vld [vmem:[#allocation7 + $0xf4] sm:$0xf]  ;;  %v3099_v22 = vld [vmem:[#allocation7 + $0x104] sm:$0xf0]  ;;  %v2950_v24 = vor.u32 %v3508_v18, %v2949_v16 }
  0x62   : > { %v3097_v19 = vld [vmem:[#allocation7 + $0xf0] sm:$0xf]  ;;  %v2946_v23 = vor.u32 %v3505_v14, %v2943_v15  ;;  %v2929_v28 = vld [vmem:[#allocation5 + $0xd8] sm:$0xf]  ;;  %v3102_v29 = vor.u32 %v3545_v21, %v3099_v22  ;;  %v3503_v30 = vld [vmem:[#allocation5 + $0xe8] sm:$0xf0] }
  0x63   : > { %980 = vmatpush.bf16.msrb.mxu0 %v2726_v25  ;;  %v3098_v25 = vor.u32 %v3547_v20, %v3097_v19  ;;  %v3542_v32 = vld [vmem:[#allocation7 + $0xd8] sm:$0xf0]  ;;  %v3540_v33 = vld [vmem:[#allocation7 + $0xcc] sm:$0xf]  ;;  %v3079_v34 = vld [vmem:[#allocation7 + $0xdc] sm:$0xf0]  ;;  %v2930_v36 = vor.u32 %v3503_v30, %v2929_v28 }
  0x64   : > { %1258 = vmatpush.bf16.msrb.mxu1 %v2874_v26  ;;  %v3500_v26 = vld [vmem:[#allocation5 + $0xd4] sm:$0xf]  ;;  %v2909_v40 = vld [vmem:[#allocation5 + $0xb0] sm:$0xf]  ;;  %v3082_v41 = vor.u32 %v3540_v33, %v3079_v34  ;;  %v3498_v42 = vld [vmem:[#allocation5 + $0xc0] sm:$0xf0] }
  0x65   : > { %1272 = vmatpush.bf16.msrb.mxu2 %v2878_v27  ;;  %1286 = vmatpush.bf16.msrb.mxu3 %v2882_v31  ;;  %v2923_v27 = vld [vmem:[#allocation5 + $0xe4] sm:$0xf0]  ;;  %v3537_v44 = vld [vmem:[#allocation7 + $0xb0] sm:$0xf0]  ;;  %v3535_v45 = vld [vmem:[#allocation7 + $0xa4] sm:$0xf]  ;;  %v2910_v47 = vor.u32 %v3498_v42, %v2909_v40 }
  0x66   : > { %v3077_v31 = vld [vmem:[#allocation7 + $0xc8] sm:$0xf]  ;;  %v2926_v35 = vor.u32 %v3500_v26, %v2923_v27  ;;  %v3059_v46 = vld [vmem:[#allocation7 + $0xb4] sm:$0xf0]  ;;  %v3532_v56 = vld [vmem:[#allocation7 + $0x88] sm:$0xf0] }
  0x67   : > { %981 = vmatpush.bf16.msrb.mxu0 %v2706_v37  ;;  %v3078_v37 = vor.u32 %v3542_v32, %v3077_v31  ;;  %v2883_v50 = vld [vmem:[#allocation5 + $0x94] sm:$0xf0]  ;;  %v2889_v51 = vld [vmem:[#allocation5 + $0x88] sm:$0xf]  ;;  %v3530_v57 = vld [vmem:[#allocation7 + $0x7c] sm:$0xf] }
  0x68   : > { %1259 = vmatpush.bf16.msrb.mxu1 %v2854_v38  ;;  %v3495_v38 = vld [vmem:[#allocation5 + $0xac] sm:$0xf]  ;;  %v3037_v55 = vld [vmem:[#allocation7 + $0x78] sm:$0xf]  ;;  %v3485_v60 = vld [vmem:[#allocation5 + $0x5c] sm:$0xf] }
  0x69   : > { %1273 = vmatpush.bf16.msrb.mxu2 %v2858_v39  ;;  %1287 = vmatpush.bf16.msrb.mxu3 %v2862_v43  ;;  %v2903_v39 = vld [vmem:[#allocation5 + $0xbc] sm:$0xf0]  ;;  %v3038_v62 = vor.u32 %v3532_v56, %v3037_v55  ;;  %v2863_v63 = vld [vmem:[#allocation5 + $0x6c] sm:$0xf0]  ;;  %v3527_v4 = vld [vmem:[#allocation7 + $0x60] sm:$0xf0] }
  0x6a   : > { %v3057_v43 = vld [vmem:[#allocation7 + $0xa0] sm:$0xf]  ;;  %v3017_v3 = vld [vmem:[#allocation7 + $0x50] sm:$0xf]  ;;  %v2866_v7 = vor.u32 %v3485_v60, %v2863_v63  ;;  %v3480_v8 = vld [vmem:[#allocation5 + $0x34] sm:$0xf] }
  0x6b   : > { %982 = vmatpush.bf16.msrb.mxu0 %v2686_v49  ;;  %v3058_v48 = vor.u32 %v3537_v44, %v3057_v43  ;;  %v3490_v49 = vld [vmem:[#allocation5 + $0x84] sm:$0xf]  ;;  %v2869_v0 = vld [vmem:[#allocation5 + $0x60] sm:$0xf]  ;;  %v3483_v14 = vld [vmem:[#allocation5 + $0x48] sm:$0xf0] }
  0x6c   : > { %1260 = vmatpush.bf16.msrb.mxu1 %v2834_v53  ;;  %v3062_v53 = vor.u32 %v3535_v45, %v3059_v46  ;;  %v2886_v59 = vor.u32 %v3490_v49, %v2883_v50  ;;  %v2997_v15 = vld [vmem:[#allocation7 + $0x28] sm:$0xf]  ;;  %v3520_v18 = vld [vmem:[#allocation7 + $0x2c] sm:$0xf]  ;;  %v2999_v19 = vld [vmem:[#allocation7 + $0x3c] sm:$0xf0] }
  0x6d   : > { %1274 = vmatpush.bf16.msrb.mxu2 %v2838_v54  ;;  %1288 = vmatpush.bf16.msrb.mxu3 %v2842_v58  ;;  %v3493_v54 = vld [vmem:[#allocation5 + $0x98] sm:$0xf0]  ;;  %v3039_v58 = vld [vmem:[#allocation7 + $0x8c] sm:$0xf0]  ;;  %v3475_v21 = vld [vmem:[#allocation5 + $0xc] sm:$0xf]  ;;  %v3002_v28 = vor.u32 %v3520_v18, %v2999_v19 }
  0x6e   : > { %v2890_v61 = vor.u32 %v3493_v54, %v2889_v51  ;;  %v3042_v2 = vor.u32 %v3530_v57, %v3039_v58  ;;  %v2823_v22 = vld [vmem:[#allocation5 + $0x1c] sm:$0xf0]  ;;  %v3478_v26 = vld [vmem:[#allocation5 + $0x20] sm:$0xf0]  ;;  %v2979_v31 = vld [vmem:[#allocation7 + $0x14] sm:$0xf0] }
  0x6f   : > { %983 = vmatpush.bf16.msrb.mxu0 %v2666_v1  ;;  %v3488_v1 = vld [vmem:[#allocation5 + $0x70] sm:$0xf0]  ;;  %v2977_v27 = vld [vmem:[#allocation7] sm:$0xf]  ;;  %v3515_v30 = vld [vmem:[#allocation7 + $0x4] sm:$0xf] }
  0x70   : > { %1261 = vmatpush.bf16.msrb.mxu1 %v2814_v5  ;;  %v3525_v5 = vld [vmem:[#allocation7 + $0x54] sm:$0xf]  ;;  %v3125_v32 = vld [vmem:[#allocation7 + $0x120] sm:$0xf]  ;;  %v3551_v34 = vld [vmem:[#allocation7 + $0x124] sm:$0xf]  ;;  %v2982_v43 = vor.u32 %v3515_v30, %v2979_v31 }
  0x71   : > { %1275 = vmatpush.bf16.msrb.mxu2 %v2818_v6  ;;  %1289 = vmatpush.bf16.msrb.mxu3 %v2822_v9  ;;  %v3019_v6 = vld [vmem:[#allocation7 + $0x64] sm:$0xf0]  ;;  %v3553_v33 = vld [vmem:[#allocation7 + $0x130] sm:$0xf0]  ;;  %v3593_v42 = vld [vmem:[#allocation8 + $0x128] sm:$0xf0] }
  0x72   : > { %984 = vmatmul.bf16.vlgmr.msrb.gmra.mxu0 %v4149_v52  ;;  %v2906_v52 = vor.u32 %v3495_v38, %v2903_v39  ;;  %v2843_v9 = vld [vmem:[#allocation5 + $0x44] sm:$0xf0]  ;;  %v3022_v16 = vor.u32 %v3525_v5, %v3019_v6  ;;  %v3554_v38 = vld [vmem:[#allocation7 + $0x138] sm:$0xf0]  ;;  %v3126_v44 = vor.u32 %v3553_v33, %v3125_v32  ;;  %v3107_v50 = vld [vmem:[#allocation7 + $0x10c] sm:$0xf0] }
  0x73   : > { %1296 = vmatpush.bf16.msra.mxu0 %v2966_v10  ;;  %1262 = vmatmul.bf16.vlgmr.msrb.gmra.mxu1 %v4159_v11  ;;  %v2870_v10 = vor.u32 %v3488_v1, %v2869_v0  ;;  %v2846_v20 = vor.u32 %v3480_v8, %v2843_v9  ;;  %v3113_v51 = vld [vmem:[#allocation7 + $0x100] sm:$0xf]  ;;  %v3261_v55 = vld [vmem:[#allocation8 + $0xf0] sm:$0xf]  ;;  %v3588_v56 = vld [vmem:[#allocation8 + $0x100] sm:$0xf0] }
  0x74   : > { %1310 = vmatpush.bf16.msra.mxu1 %v2970_v12  ;;  %1276 = vmatmul.bf16.vlgmr.msrb.gmra.mxu2 %v4159_v11  ;;  %v3018_v12 = vor.u32 %v3527_v4, %v3017_v3  ;;  %v4169_v54 = vld [vmem:[%s647_s28] sm:$0xff]  ;;  %v3085_v60 = vld [vmem:[#allocation7 + $0xd0] sm:$0xf]  ;;  %v3262_v63 = vor.u32 %v3588_v56, %v3261_v55  ;;  %v3087_v0 = vld [vmem:[#allocation7 + $0xe4] sm:$0xf0]  ;;  %s4460_s28 = sld [smem:[#allocation26_spill]] }
  0x75   : > { %1588 = vmatpush.bf16.msra.mxu2 %v3118_v13  ;;  %1602 = vmatpush.bf16.msra.mxu3 %v3122_v17  ;;  %v2849_v13 = vld [vmem:[#allocation5 + $0x38] sm:$0xf]  ;;  %v3522_v17 = vld [vmem:[#allocation7 + $0x38] sm:$0xf0]  ;;  %v3241_v3 = vld [vmem:[#allocation8 + $0xc8] sm:$0xf] }
  0x76   : > { %1290 = vmatmul.bf16.vlgmr.msrb.gmra.mxu3 %v4159_v11  ;;  %v3093_v1 = vld [vmem:[#allocation7 + $0xd8] sm:$0xf]  ;;  %v3583_v4 = vld [vmem:[#allocation8 + $0xd8] sm:$0xf0]  ;;  %v3065_v8 = vld [vmem:[#allocation7 + $0xa8] sm:$0xf] }
  0x77   : > { %1297 = vmatpush.bf16.msra.mxu0 %v2946_v23  ;;  %v2850_v23 = vor.u32 %v3483_v14, %v2849_v13  ;;  %v3538_v9 = vld [vmem:[#allocation7 + $0xb8] sm:$0xf0]  ;;  %v3067_v13 = vld [vmem:[#allocation7 + $0xbc] sm:$0xf0]  ;;  %v3073_v14 = vld [vmem:[#allocation7 + $0xb0] sm:$0xf] }
  0x78   : > { %1311 = vmatpush.bf16.msra.mxu1 %v2950_v24  ;;  %v2998_v24 = vor.u32 %v3522_v17, %v2997_v15  ;;  %v3221_v15 = vld [vmem:[#allocation8 + $0xa0] sm:$0xf]  ;;  %v3066_v17 = vor.u32 %v3538_v9, %v3065_v8  ;;  %v3025_v32 = vld [vmem:[#allocation7 + $0x58] sm:$0xf]  ;;  %v3528_v33 = vld [vmem:[#allocation7 + $0x68] sm:$0xf0] }
  0x79   : > { %1589 = vmatpush.bf16.msra.mxu2 %v3098_v25  ;;  %1603 = vmatpush.bf16.msra.mxu3 %v3102_v29  ;;  %v2829_v25 = vld [vmem:[#allocation5 + $0x10] sm:$0xf]  ;;  %v3517_v29 = vld [vmem:[#allocation7 + $0x10] sm:$0xf0]  ;;  %v2985_v55 = vld [vmem:[#allocation7 + $0x8] sm:$0xf] }
  0x7a   : > { %v2830_v39 = vor.u32 %v3478_v26, %v2829_v25  ;;  %v2978_v40 = vor.u32 %v3517_v29, %v2977_v27  ;;  %v3053_v25 = vld [vmem:[#allocation7 + $0x88] sm:$0xf]  ;;  %v3534_v26 = vld [vmem:[#allocation7 + $0x98] sm:$0xf0]  ;;  %v3201_v27 = vld [vmem:[#allocation8 + $0x78] sm:$0xf]  ;;  %s2479_s29 = scalar_lea.hbm %s4460_s28, %s3628_s26 }
  0x7b   : > { %1298 = vmatpush.bf16.msra.mxu0 %v2926_v35  ;;  %v2826_v35 = vor.u32 %v3475_v21, %v2823_v22  ;;  %v3533_v21 = vld [vmem:[#allocation7 + $0x90] sm:$0xf0]  ;;  %v3531_v22 = vld [vmem:[#allocation7 + $0x84] sm:$0xf]  ;;  %v3054_v31 = vor.u32 %v3534_v26, %v3053_v25  ;;  %v3518_v56 = vld [vmem:[#allocation7 + $0x18] sm:$0xf0] }
  0x7c   : > { %1312 = vmatpush.bf16.msra.mxu1 %v2930_v36  ;;  %v3127_v36 = vld [vmem:[#allocation7 + $0x134] sm:$0xf0]  ;;  %v3590_v25 = vld [vmem:[#allocation8 + $0x110] sm:$0xf0]  ;;  %s630_s15 = scalar_lea.vmem [#allocation10], %s2634_s18  ;;  %s2482_s21 = sshll.u32 %s2479_s29, 4  ;;  %s2483_s21 = int_to_ptr.hbm [resolvable:$true] %s2482_s21 }
  0x7d   : > { %1590 = vmatpush.bf16.msra.mxu2 %v3078_v37  ;;  %1604 = vmatpush.bf16.msra.mxu3 %v3082_v41  ;;  %v3133_v37 = vld [vmem:[#allocation7 + $0x128] sm:$0xf]  ;;  %v3281_v41 = vld [vmem:[#allocation8 + $0x118] sm:$0xf]  ;;  %v3130_v45 = vor.u32 %v3551_v34, %v3127_v36  ;;  %v3526_v34 = vld [vmem:[#allocation7 + $0x5c] sm:$0xf] }
  0x7e   : > { %v3134_v46 = vor.u32 %v3554_v38, %v3133_v37  ;;  %v3282_v49 = vor.u32 %v3593_v42, %v3281_v41  ;;  %v3027_v36 = vld [vmem:[#allocation7 + $0x6c] sm:$0xf0]  ;;  %v3033_v37 = vld [vmem:[#allocation7 + $0x60] sm:$0xf]  ;;  %v3529_v38 = vld [vmem:[#allocation7 + $0x70] sm:$0xf0]  ;;  %v3026_v41 = vor.u32 %v3528_v33, %v3025_v32 }
  0x7f   : > { %1299 = vmatpush.bf16.msra.mxu0 %v2906_v52  ;;  %v3105_v52 = vld [vmem:[#allocation7 + $0xf8] sm:$0xf]  ;;  %v3030_v42 = vor.u32 %v3526_v34, %v3027_v36  ;;  %v3249_v32 = vld [vmem:[#allocation8 + $0xd0] sm:$0xf]  ;;  %v3584_v34 = vld [vmem:[#allocation8 + $0xe0] sm:$0xf0] }
  0x80   : > { %1313 = vmatpush.bf16.msra.mxu1 %v2910_v47  ;;  %v3548_v47 = vld [vmem:[#allocation7 + $0x108] sm:$0xf0]  ;;  %v3291_v8 = vld [vmem:[#allocation8 + $0x134] sm:$0xf0]  ;;  %v3251_v36 = vld [vmem:[#allocation8 + $0xe4] sm:$0xf0] }
  0x81   : > { %1591 = vmatpush.bf16.msra.mxu2 %v3058_v48  ;;  %1605 = vmatpush.bf16.msra.mxu3 %v3062_v53  ;;  %v3546_v48 = vld [vmem:[#allocation7 + $0xfc] sm:$0xf]  ;;  %v3549_v53 = vld [vmem:[#allocation7 + $0x110] sm:$0xf0]  ;;  %v3106_v57 = vor.u32 %v3548_v47, %v3105_v52  ;;  %v3007_v47 = vld [vmem:[#allocation7 + $0x44] sm:$0xf0] }
  0x82   : > { %v3110_v58 = vor.u32 %v3546_v48, %v3107_v50  ;;  %v3013_v48 = vld [vmem:[#allocation7 + $0x38] sm:$0xf]  ;;  %v3161_v50 = vld [vmem:[#allocation8 + $0x28] sm:$0xf]  ;;  %s2480_s16 = sshll.u32 %s630_s15, 4  ;;  %s2468_s25 = scalar_lea.sflag [#allocation4], %s628_s0  ;;  %s2481_s16 = int_to_ptr.vmem [resolvable:$true] %s2480_s16 }
  0x83   : > { %1300 = vmatpush.bf16.msra.mxu0 %v2886_v59  ;;  %v3114_v59 = vor.u32 %v3549_v53, %v3113_v51  ;;  %v3563_v51 = vld [vmem:[#allocation8 + $0x38] sm:$0xf0]  ;;  %s3878_s23 = sshra.s32 %s2483_s21, 4  ;;  %s3884_s18 = scalar_lea.hbm %s4460_s28, 16  ;;  %s3879_s23 = int_to_ptr.hbm [resolvable:$true] %s3878_s23 }
  0x84   : > { %1314 = vmatpush.bf16.msra.mxu1 %v2890_v61  ;;  %v3543_v61 = vld [vmem:[#allocation7 + $0xe0] sm:$0xf0]  ;;  %s3880_s24 = scalar_lea.hbm %s3879_s23, 8  ;;  %p3885_p3 = scmp.lt.s32.totalorder %s3879_s23, %s4460_s28 }
  0x85   : > { %1592 = vmatpush.bf16.msra.mxu2 %v3038_v62  ;;  %1606 = vmatpush.bf16.msra.mxu3 %v3042_v2  ;;  %v3541_v62 = vld [vmem:[#allocation7 + $0xd4] sm:$0xf]  ;;  %v3544_v2 = vld [vmem:[#allocation7 + $0xe8] sm:$0xf0]  ;;  %v3086_v5 = vor.u32 %v3543_v61, %v3085_v60  ;;  %v2987_v60 = vld [vmem:[#allocation7 + $0x1c] sm:$0xf0]  ;;  %p3881_p0 = scmp.ne.s32.totalorder %s3879_s23, %s3880_s24  ;;  %p3886_p4 = scmp.lt.s32.totalorder %s3884_s18, %s3880_s24 }
  0x86   : > { %v3090_v6 = vor.u32 %v3541_v62, %v3087_v0  ;;  %v2993_v61 = vld [vmem:[#allocation7 + $0x10] sm:$0xf]  ;;  %v3162_v62 = vor.u32 %v3563_v51, %v3161_v50  ;;  %v3141_v0 = vld [vmem:[#allocation8] sm:$0xf] }
  0x87   : > { %1301 = vmatpush.bf16.msra.mxu0 %v2866_v7  ;;  %v3094_v7 = vor.u32 %v3544_v2, %v3093_v1  ;;  %v3558_v1 = vld [vmem:[#allocation8 + $0x10] sm:$0xf0]  ;;  %v3591_v2 = vld [vmem:[#allocation8 + $0x11c] sm:$0xf]  ;;  %p3882_p1 = pnand %p3881_p0, %p4075_p5  ;;  %p3887_p7 = por %p3886_p4, %p3885_p3 }
  0x88   : > { %1315 = vmatpush.bf16.msra.mxu1 %v2870_v10  ;;  %v3536_v10 = vld [vmem:[#allocation7 + $0xac] sm:$0xf] }
  0x89   : > { %1593 = vmatpush.bf16.msra.mxu2 %v3018_v12  ;;  %1607 = vmatpush.bf16.msra.mxu3 %v3022_v16  ;;  %v3242_v12 = vor.u32 %v3583_v4, %v3241_v3  ;;  %v3578_v16 = vld [vmem:[#allocation8 + $0xb0] sm:$0xf0]  ;;  %v3070_v18 = vor.u32 %v3536_v10, %v3067_v13  ;;  %v3283_v3 = vld [vmem:[#allocation8 + $0x12c] sm:$0xf0]  ;;  %v3289_v4 = vld [vmem:[#allocation8 + $0x120] sm:$0xf]  ;;  %p3883_p2 = pneg %p3882_p1 }
  0x8a   : > { %v3595_v13 = vld [vmem:[#allocation8 + $0x138] sm:$0xf0] }
  0x8b   : > { %1302 = vmatpush.bf16.msra.mxu0 %v2846_v20  ;;  %v3045_v20 = vld [vmem:[#allocation7 + $0x80] sm:$0xf]  ;;  %p3888_p8 = pnand %p3887_p7, %p3883_p2 }
  0x8c   : > { %1316 = vmatpush.bf16.msra.mxu1 %v2850_v23  ;;  %v3222_v23 = vor.u32 %v3578_v16, %v3221_v15  ;;  %v3046_v29 = vor.u32 %v3533_v21, %v3045_v20  ;;  %v3589_v21 = vld [vmem:[#allocation8 + $0x108] sm:$0xf0] }
  0x8d   : > { %1594 = vmatpush.bf16.msra.mxu2 %v2998_v24  ;;  %1608 = vmatpush.bf16.msra.mxu3 %v3002_v28  ;;  %v3047_v24 = vld [vmem:[#allocation7 + $0x94] sm:$0xf0]  ;;  %v3573_v28 = vld [vmem:[#allocation8 + $0x88] sm:$0xf0] }
  0x8e   : > { %v3050_v30 = vor.u32 %v3531_v22, %v3047_v24  ;;  %v3587_v22 = vld [vmem:[#allocation8 + $0xfc] sm:$0xf]  ;;  %v3277_v24 = vld [vmem:[#allocation8 + $0x100] sm:$0xf] }
  0x8f   : > { %1303 = vmatpush.bf16.msra.mxu0 %v2826_v35  ;;  %v3202_v35 = vor.u32 %v3573_v28, %v3201_v27  ;;  %v4179_v27 = vld [vmem:[%s653_s17] sm:$0xff]  ;;  %v3278_v33 = vor.u32 %v3590_v25, %v3277_v24 }
  0x90   : > { %1317 = vmatpush.bf16.msra.mxu1 %v2830_v39  ;;  %v3181_v39 = vld [vmem:[#allocation8 + $0x50] sm:$0xf] }
  0x91   : > { %1595 = vmatpush.bf16.msra.mxu2 %v2978_v40  ;;  %1609 = vmatpush.bf16.msra.mxu3 %v2982_v43  ;;  %v3568_v40 = vld [vmem:[#allocation8 + $0x60] sm:$0xf0]  ;;  %v3034_v43 = vor.u32 %v3529_v38, %v3033_v37  ;;  %v3257_v37 = vld [vmem:[#allocation8 + $0xd8] sm:$0xf]  ;;  %v3585_v38 = vld [vmem:[#allocation8 + $0xe8] sm:$0xf0] }
  0x92   : > { %1304 = vmatmul.bf16.vlgmr.msra.gmra.mxu0 %v4159_v11  ;;  %v3182_v52 = vor.u32 %v3568_v40, %v3181_v39  ;;  %v3250_v40 = vor.u32 %v3584_v34, %v3249_v32  ;;  %v3557_v32 = vld [vmem:[#allocation8 + $0xc] sm:$0xf]  ;;  %v3157_v34 = vld [vmem:[#allocation8 + $0x10] sm:$0xf] }
  0x93   : > { %1616 = vmatpush.bf16.msrb.mxu0 %v3126_v44  ;;  %1318 = vmatmul.bf16.vlgmr.msra.gmra.mxu1 %v4159_v11  ;;  %v3539_v11 = vld [vmem:[#allocation7 + $0xc0] sm:$0xf0]  ;;  %v3005_v44 = vld [vmem:[#allocation7 + $0x30] sm:$0xf] }
  0x94   : > { %1630 = vmatpush.bf16.msrb.mxu1 %v3130_v45  ;;  %1610 = vmatmul.bf16.vlgmr.msra.gmra.mxu3 %v4169_v54  ;;  %v3074_v19 = vor.u32 %v3539_v11, %v3073_v14  ;;  %v3523_v45 = vld [vmem:[#allocation7 + $0x40] sm:$0xf0]  ;;  %v3142_v14 = vor.u32 %v3558_v1, %v3141_v0  ;;  %v3286_v11 = vor.u32 %v3591_v2, %v3283_v3  ;;  %v3566_v2 = vld [vmem:[#allocation8 + $0x54] sm:$0xf]  ;;  %v3183_v3 = vld [vmem:[#allocation8 + $0x64] sm:$0xf0] }
  0x95   : > { %1644 = vmatpush.bf16.msrb.mxu2 %v3134_v46  ;;  %1922 = vmatpush.bf16.msrb.mxu3 %v3282_v49  ;;  %v3521_v46 = vld [vmem:[#allocation7 + $0x34] sm:$0xf]  ;;  %v3524_v49 = vld [vmem:[#allocation7 + $0x48] sm:$0xf0]  ;;  %v3006_v53 = vor.u32 %v3523_v45, %v3005_v44  ;;  %v3229_v44 = vld [vmem:[#allocation8 + $0xa8] sm:$0xf]  ;;  %v3258_v45 = vor.u32 %v3585_v38, %v3257_v37 }
  0x96   : > { %1596 = vmatmul.bf16.vlgmr.msra.gmra.mxu2 %v4169_v54 }
  0x97   : > { %1617 = vmatpush.bf16.msrb.mxu0 %v3106_v57  ;;  %v3010_v57 = vor.u32 %v3521_v46, %v3007_v47  ;;  %v3579_v46 = vld [vmem:[#allocation8 + $0xb8] sm:$0xf0]  ;;  %v3231_v47 = vld [vmem:[#allocation8 + $0xbc] sm:$0xf0] }
  0x98   : > { %1631 = vmatpush.bf16.msrb.mxu1 %v3110_v58  ;;  %v3014_v58 = vor.u32 %v3524_v49, %v3013_v48  ;;  %v3237_v48 = vld [vmem:[#allocation8 + $0xb0] sm:$0xf]  ;;  %v3230_v50 = vor.u32 %v3579_v46, %v3229_v44 }
  0x99   : > { %1645 = vmatpush.bf16.msrb.mxu2 %v3114_v59  ;;  %1923 = vmatpush.bf16.msrb.mxu3 %v3262_v63  ;;  %v3516_v59 = vld [vmem:[#allocation7 + $0xc] sm:$0xf]  ;;  %v3519_v63 = vld [vmem:[#allocation7 + $0x20] sm:$0xf0] }
  0x9a   : > { %v2990_v9 = vor.u32 %v3516_v59, %v2987_v60  ;;  %v2994_v10 = vor.u32 %v3519_v63, %v2993_v61  ;;  %v3572_v59 = vld [vmem:[#allocation8 + $0x84] sm:$0xf]  ;;  %v3211_v60 = vld [vmem:[#allocation8 + $0x94] sm:$0xf0]  ;;  %v3217_v61 = vld [vmem:[#allocation8 + $0x88] sm:$0xf] }
  0x9b   : > { %1618 = vmatpush.bf16.msrb.mxu0 %v3086_v5  ;;  %v2986_v5 = vor.u32 %v3518_v56, %v2985_v55  ;;  %v3203_v55 = vld [vmem:[#allocation8 + $0x8c] sm:$0xf0]  ;;  %v3209_v56 = vld [vmem:[#allocation8 + $0x80] sm:$0xf]  ;;  %v3214_v1 = vor.u32 %v3572_v59, %v3211_v60 }
  0x9c   : > { %1632 = vmatpush.bf16.msrb.mxu1 %v3090_v6  ;;  %v3594_v6 = vld [vmem:[#allocation8 + $0x130] sm:$0xf0] }
  0x9d   : > { %1646 = vmatpush.bf16.msrb.mxu2 %v3094_v7  ;;  %1924 = vmatpush.bf16.msrb.mxu3 %v3242_v12  ;;  %v3592_v7 = vld [vmem:[#allocation8 + $0x124] sm:$0xf]  ;;  %v3297_v12 = vld [vmem:[#allocation8 + $0x128] sm:$0xf]  ;;  %v3290_v15 = vor.u32 %v3594_v6, %v3289_v4  ;;  %v3189_v4 = vld [vmem:[#allocation8 + $0x58] sm:$0xf] }
  0x9e   : > { %v3294_v16 = vor.u32 %v3592_v7, %v3291_v8  ;;  %v3298_v20 = vor.u32 %v3595_v13, %v3297_v12  ;;  %v3569_v6 = vld [vmem:[#allocation8 + $0x68] sm:$0xf0]  ;;  %v3567_v7 = vld [vmem:[#allocation8 + $0x5c] sm:$0xf]  ;;  %v3191_v8 = vld [vmem:[#allocation8 + $0x6c] sm:$0xf0]  ;;  %v3186_v12 = vor.u32 %v3566_v2, %v3183_v3 }
  0x9f   : > { %1619 = vmatpush.bf16.msrb.mxu0 %v3066_v17  ;;  %v3586_v17 = vld [vmem:[#allocation8 + $0xf4] sm:$0xf]  ;;  %v3190_v13 = vor.u32 %v3569_v6, %v3189_v4  ;;  %v3600_v2 = vld [vmem:[%s4427_s13 + $0x20] sm:$0xff]  ;;  %v3625_v6 = vld [vmem:[%s4427_s13 + $0xe8] sm:$0xff] }
  0xa0   : > { %1633 = vmatpush.bf16.msrb.mxu1 %v3070_v18  ;;  %v3263_v18 = vld [vmem:[#allocation8 + $0x104] sm:$0xf0]  ;;  %v3618_v59 = vld [vmem:[%s4427_s13 + $0xb0] sm:$0xff]  ;;  %v3608_v3 = vld [vmem:[%s4427_s13 + $0x60] sm:$0xff] }
  0xa1   : > { %1647 = vmatpush.bf16.msrb.mxu2 %v3074_v19  ;;  %1925 = vmatpush.bf16.msrb.mxu3 %v3222_v23  ;;  %v3269_v19 = vld [vmem:[#allocation8 + $0xf8] sm:$0xf]  ;;  %v3271_v23 = vld [vmem:[#allocation8 + $0x10c] sm:$0xf0]  ;;  %v3266_v26 = vor.u32 %v3586_v17, %v3263_v18  ;;  %v3564_v18 = vld [vmem:[#allocation8 + $0x40] sm:$0xf0] }
  0xa2   : > { %v3270_v28 = vor.u32 %v3589_v21, %v3269_v19  ;;  %v3562_v19 = vld [vmem:[#allocation8 + $0x34] sm:$0xf]  ;;  %v3177_v21 = vld [vmem:[#allocation8 + $0x38] sm:$0xf] }
  0xa3   : > { %1620 = vmatpush.bf16.msrb.mxu0 %v3046_v29  ;;  %v3274_v29 = vor.u32 %v3587_v22, %v3271_v23  ;;  %v3565_v22 = vld [vmem:[#allocation8 + $0x48] sm:$0xf0]  ;;  %v3626_v60 = vld [vmem:[%s4427_s13 + $0xf0] sm:$0xff] }
  0xa4   : > { %1634 = vmatpush.bf16.msrb.mxu1 %v3050_v30  ;;  %v3581_v30 = vld [vmem:[#allocation8 + $0xcc] sm:$0xf] }
  0xa5   : > { %1648 = vmatpush.bf16.msrb.mxu2 %v3054_v31  ;;  %1926 = vmatpush.bf16.msrb.mxu3 %v3202_v35  ;;  %v3243_v31 = vld [vmem:[#allocation8 + $0xdc] sm:$0xf0]  ;;  %v3582_v35 = vld [vmem:[#allocation8 + $0xd4] sm:$0xf] }
  0xa6   : > { %v3246_v39 = vor.u32 %v3581_v30, %v3243_v31  ;;  %v3178_v30 = vor.u32 %v3565_v22, %v3177_v21  ;;  %v3559_v31 = vld [vmem:[#allocation8 + $0x18] sm:$0xf0]  ;;  %v3614_v22 = vld [vmem:[%s4427_s13 + $0x90] sm:$0xff] }
  0xa7   : > { %1621 = vmatpush.bf16.msrb.mxu0 %v3026_v41  ;;  %v3254_v41 = vor.u32 %v3582_v35, %v3251_v36  ;;  %v3560_v35 = vld [vmem:[#allocation8 + $0x20] sm:$0xf0] }
  0xa8   : > { %1635 = vmatpush.bf16.msrb.mxu1 %v3030_v42  ;;  %v3576_v42 = vld [vmem:[#allocation8 + $0xa4] sm:$0xf] }
  0xa9   : > { %1649 = vmatpush.bf16.msrb.mxu2 %v3034_v43  ;;  %1927 = vmatpush.bf16.msrb.mxu3 %v3182_v52  ;;  %v3223_v43 = vld [vmem:[#allocation8 + $0xb4] sm:$0xf0]  ;;  %v3577_v52 = vld [vmem:[#allocation8 + $0xac] sm:$0xf] }
  0xaa   : > { %v3226_v49 = vor.u32 %v3576_v42, %v3223_v43  ;;  %v3234_v51 = vor.u32 %v3577_v52, %v3231_v47 }
  0xab   : > { %1622 = vmatpush.bf16.msrb.mxu0 %v3006_v53  ;;  %v3571_v53 = vld [vmem:[#allocation8 + $0x7c] sm:$0xf] }
  0xac   : > { %1636 = vmatpush.bf16.msrb.mxu1 %v3010_v57  ;;  %v3206_v63 = vor.u32 %v3571_v53, %v3203_v55  ;;  %v3602_v55 = vld [vmem:[%s4427_s13 + $0x30] sm:$0xff] }
  0xad   : > { %1650 = vmatpush.bf16.msrb.mxu2 %v3014_v58  ;;  %1928 = vmatpush.bf16.msrb.mxu3 %v3162_v62  ;;  %v3574_v58 = vld [vmem:[#allocation8 + $0x90] sm:$0xf0]  ;;  %v3575_v62 = vld [vmem:[#allocation8 + $0x98] sm:$0xf0] }
  0xae   : > { %v3210_v0 = vor.u32 %v3574_v58, %v3209_v56  ;;  %v3610_v56 = vld [vmem:[%s4427_s13 + $0x70] sm:$0xff]  ;;  %v3627_v58 = vld [vmem:[%s4427_s13 + $0xf8] sm:$0xff] }
  0xaf   : > { %1623 = vmatpush.bf16.msrb.mxu0 %v2986_v5  ;;  %v3218_v5 = vor.u32 %v3575_v62, %v3217_v61  ;;  %v3601_v61 = vld [vmem:[%s4427_s13 + $0x28] sm:$0xff] }
  0xb0   : > { %1637 = vmatpush.bf16.msrb.mxu1 %v2990_v9  ;;  %v3197_v9 = vld [vmem:[#allocation8 + $0x60] sm:$0xf]  ;;  %v3609_v62 = vld [vmem:[%s4427_s13 + $0x68] sm:$0xff] }
  0xb1   : > { %1651 = vmatpush.bf16.msrb.mxu2 %v2994_v10  ;;  %1929 = vmatpush.bf16.msrb.mxu3 %v3142_v14  ;;  %v3570_v10 = vld [vmem:[#allocation8 + $0x70] sm:$0xf0]  ;;  %v3194_v14 = vor.u32 %v3567_v7, %v3191_v8  ;;  %v3599_v8 = vld [vmem:[%s4427_s13 + $0x18] sm:$0xff] }
  0xb2   : > { %1624 = vmatmul.bf16.vlgmr.msrb.gmra.mxu0 %v4169_v54  ;;  %v3198_v17 = vor.u32 %v3570_v10, %v3197_v9  ;;  %v3607_v9 = vld [vmem:[%s4427_s13 + $0x58] sm:$0xff] }
  0xb3   : > { %1936 = vmatpush.bf16.msra.mxu0 %v3286_v11  ;;  %1638 = vmatmul.bf16.vlgmr.msrb.gmra.mxu1 %v4169_v54  ;;  %v3561_v11 = vld [vmem:[#allocation8 + $0x2c] sm:$0xf] }
  0xb4   : > { %1950 = vmatpush.bf16.msra.mxu1 %v3290_v15  ;;  %1652 = vmatmul.bf16.vlgmr.msrb.gmra.mxu2 %v4169_v54  ;;  %v3580_v54 = vld [vmem:[#allocation8 + $0xc0] sm:$0xf0]  ;;  %v3163_v15 = vld [vmem:[#allocation8 + $0x3c] sm:$0xf0] }
  0xb5   : > { %1964 = vmatpush.bf16.msra.mxu2 %v3294_v16  ;;  %1978 = vmatpush.bf16.msra.mxu3 %v3298_v20  ;;  %v3238_v57 = vor.u32 %v3580_v54, %v3237_v48  ;;  %v3169_v16 = vld [vmem:[#allocation8 + $0x30] sm:$0xf]  ;;  %v3171_v20 = vld [vmem:[#allocation8 + $0x44] sm:$0xf0]  ;;  %v3166_v23 = vor.u32 %v3561_v11, %v3163_v15 }
  0xb6   : > { %1930 = vmatmul.bf16.vlgmr.msrb.gmra.mxu3 %v4179_v27  ;;  %v3170_v24 = vor.u32 %v3564_v18, %v3169_v16  ;;  %v3174_v25 = vor.u32 %v3562_v19, %v3171_v20  ;;  %v3598_v11 = vld [vmem:[%s4427_s13 + $0x10] sm:$0xff]  ;;  %v3623_v18 = vld [vmem:[%s4427_s13 + $0xd8] sm:$0xff]  ;;  %v3597_v19 = vld [vmem:[%s4427_s13 + $0x8] sm:$0xff] }
  0xb7   : > { %1937 = vmatpush.bf16.msra.mxu0 %v3266_v26  ;;  %v3556_v26 = vld [vmem:[#allocation8 + $0x4] sm:$0xf]  ;;  %v3606_v15 = vld [vmem:[%s4427_s13 + $0x50] sm:$0xff]  ;;  %v3605_v20 = vld [vmem:[%s4427_s13 + $0x48] sm:$0xff] }
  0xb8   : > { %1951 = vmatpush.bf16.msra.mxu1 %v3270_v28  ;;  %v3143_v28 = vld [vmem:[#allocation8 + $0x14] sm:$0xf0] }
  0xb9   : > { %1965 = vmatpush.bf16.msra.mxu2 %v3274_v29  ;;  %1979 = vmatpush.bf16.msra.mxu3 %v3278_v33  ;;  %v3149_v29 = vld [vmem:[#allocation8 + $0x8] sm:$0xf]  ;;  %v3151_v33 = vld [vmem:[#allocation8 + $0x1c] sm:$0xf0]  ;;  %v3146_v36 = vor.u32 %v3556_v26, %v3143_v28 }
  0xba   : > { %v3150_v37 = vor.u32 %v3559_v31, %v3149_v29  ;;  %v3154_v38 = vor.u32 %v3557_v32, %v3151_v33  ;;  %v3596_v26 = vld [vmem:[%s4427_s13] sm:$0xff]  ;;  %v3621_v31 = vld [vmem:[%s4427_s13 + $0xc8] sm:$0xff] }
  0xbb   : > { %1938 = vmatpush.bf16.msra.mxu0 %v3246_v39  ;;  %v3158_v39 = vor.u32 %v3560_v35, %v3157_v34  ;;  %v3604_v28 = vld [vmem:[%s4427_s13 + $0x40] sm:$0xff] }
  0xbc   : > { %1952 = vmatpush.bf16.msra.mxu1 %v3250_v40  ;;  %v3612_v32 = vld [vmem:[%s4427_s13 + $0x80] sm:$0xff] }
  0xbd   : > { %1966 = vmatpush.bf16.msra.mxu2 %v3254_v41  ;;  %1980 = vmatpush.bf16.msra.mxu3 %v3258_v45  ;;  %v3620_v33 = vld [vmem:[%s4427_s13 + $0xc0] sm:$0xff] }
  0xbf   : > { %1939 = vmatpush.bf16.msra.mxu0 %v3226_v49 }
  0xc0   : > { %1953 = vmatpush.bf16.msra.mxu1 %v3230_v50  ;;  %v3603_v50 = vld [vmem:[%s4427_s13 + $0x38] sm:$0xff] }
  0xc1   : > { %1967 = vmatpush.bf16.msra.mxu2 %v3234_v51  ;;  %1981 = vmatpush.bf16.msra.mxu3 %v3238_v57  ;;  %v3611_v51 = vld [vmem:[%s4427_s13 + $0x78] sm:$0xff] }
  0xc2   : > { %v3619_v57 = vld [vmem:[%s4427_s13 + $0xb8] sm:$0xff] }
  0xc3   : > { %1940 = vmatpush.bf16.msra.mxu0 %v3206_v63 }
  0xc4   : > { %1954 = vmatpush.bf16.msra.mxu1 %v3210_v0 }
  0xc5   : > { %1968 = vmatpush.bf16.msra.mxu2 %v3214_v1  ;;  %1982 = vmatpush.bf16.msra.mxu3 %v3218_v5  ;;  %v3617_v5 = vld [vmem:[%s4427_s13 + $0xa8] sm:$0xff] }
  0xc7   : > { %1941 = vmatpush.bf16.msra.mxu0 %v3186_v12  ;;  %v3616_v12 = vld [vmem:[%s4427_s13 + $0xa0] sm:$0xff] }
  0xc8   : > { %1955 = vmatpush.bf16.msra.mxu1 %v3190_v13  ;;  %v3624_v13 = vld [vmem:[%s4427_s13 + $0xe0] sm:$0xff] }
  0xc9   : > { %1969 = vmatpush.bf16.msra.mxu2 %v3194_v14  ;;  %1983 = vmatpush.bf16.msra.mxu3 %v3198_v17  ;;  %v3615_v17 = vld [vmem:[%s4427_s13 + $0x98] sm:$0xff] }
  0xcb   : > { %1942 = vmatpush.bf16.msra.mxu0 %v3166_v23  ;;  %v3622_v23 = vld [vmem:[%s4427_s13 + $0xd0] sm:$0xff] }
  0xcc   : > { %1956 = vmatpush.bf16.msra.mxu1 %v3170_v24 }
  0xcd   : > { %1970 = vmatpush.bf16.msra.mxu2 %v3174_v25  ;;  %1984 = vmatpush.bf16.msra.mxu3 %v3178_v30  ;;  %v3613_v30 = vld [vmem:[%s4427_s13 + $0x88] sm:$0xff] }
  0xcf   : > { %1943 = vmatpush.bf16.msra.mxu0 %v3146_v36  ;;  %v4189_v40 = vpop.f32.mrf.mxu0 }
  0xd0   : > { %1957 = vmatpush.bf16.msra.mxu1 %v3150_v37  ;;  %v4191_v41 = vpop.f32.mrf.mxu1 }
  0xd1   : > { %1971 = vmatpush.bf16.msra.mxu2 %v3154_v38  ;;  %1985 = vmatpush.bf16.msra.mxu3 %v3158_v39 }
  0xd2   : > { %1944 = vmatmul.bf16.vlgmr.msra.gmra.mxu0 %v4179_v27 }
  0xd3   : > { %1958 = vmatmul.bf16.vlgmr.msra.gmra.mxu1 %v4179_v27  ;;  %2306 = vmatpush.bf16.msrb.mxu0 %v3603_v50 }
  0xd4   : > { %1972 = vmatmul.bf16.vlgmr.msra.gmra.mxu2 %v4179_v27  ;;  %1986 = vmatmul.bf16.vlgmr.msra.gmra.mxu3 %v4179_v27 }
  0xd5   : > { %2320 = vmatpush.bf16.msrb.mxu1 %v3611_v51  ;;  %2334 = vmatpush.bf16.msrb.mxu2 %v3619_v57  ;;  %v2016_v57 = vld [vmem:[%s4426_s12] sm:$0xf] }
  0xd6   : > { %2348 = vmatpush.bf16.msrb.mxu3 %v3627_v58 }
  0xd7   : > { %v4193_v42 = vpop.f32.mrf.mxu2  ;;  %v4197_v44 = vpop.f32.mrf.mxu0  ;;  %2307 = vmatpush.bf16.msrb.mxu0 %v3602_v55 }
  0xd8   : > { %v4199_v45 = vpop.f32.mrf.mxu1 }
  0xd9   : > { %v4195_v43 = vpop.f32.mrf.mxu3  ;;  %2321 = vmatpush.bf16.msrb.mxu1 %v3610_v56  ;;  %2335 = vmatpush.bf16.msrb.mxu2 %v3618_v59 }
  0xda   : > { %2349 = vmatpush.bf16.msrb.mxu3 %v3626_v60 }
  0xdb   : > { %2308 = vmatpush.bf16.msrb.mxu0 %v3601_v61 }
  0xdd   : > { %2322 = vmatpush.bf16.msrb.mxu1 %v3609_v62  ;;  %2336 = vmatpush.bf16.msrb.mxu2 %v3617_v5  ;;  %v2018_v62 = vperm.slane %v2016_v57, 0 }
  0xde   : > { %2350 = vmatpush.bf16.msrb.mxu3 %v3625_v6 }
  0xdf   : > { %v4201_v46 = vpop.f32.mrf.mxu2  ;;  %2309 = vmatpush.bf16.msrb.mxu0 %v3600_v2 }
  0xe1   : > { %v4203_v52 = vpop.f32.mrf.mxu3  ;;  %2323 = vmatpush.bf16.msrb.mxu1 %v3608_v3  ;;  %2337 = vmatpush.bf16.msrb.mxu2 %v3616_v12 }
  0xe2   : > { %2351 = vmatpush.bf16.msrb.mxu3 %v3624_v13 }
  0xe3   : > { %2310 = vmatpush.bf16.msrb.mxu0 %v3599_v8 }
  0xe5   : > { %2324 = vmatpush.bf16.msrb.mxu1 %v3607_v9  ;;  %2338 = vmatpush.bf16.msrb.mxu2 %v3615_v17  ;;  %v2020_v17 = vperm.slane %v2016_v57, 2 }
  0xe6   : > { %2352 = vmatpush.bf16.msrb.mxu3 %v3623_v18 }
  0xe7   : > { %2311 = vmatpush.bf16.msrb.mxu0 %v3598_v11 }
  0xe9   : > { %2325 = vmatpush.bf16.msrb.mxu1 %v3606_v15  ;;  %2339 = vmatpush.bf16.msrb.mxu2 %v3614_v22 }
  0xea   : > { %2353 = vmatpush.bf16.msrb.mxu3 %v3622_v23 }
  0xeb   : > { %2312 = vmatpush.bf16.msrb.mxu0 %v3597_v19 }
  0xed   : > { %2326 = vmatpush.bf16.msrb.mxu1 %v3605_v20  ;;  %2340 = vmatpush.bf16.msrb.mxu2 %v3613_v30 }
  0xee   : > { %2354 = vmatpush.bf16.msrb.mxu3 %v3621_v31 }
  0xef   : > { %v4205_v47 = vpop.f32.mrf.mxu0  ;;  %2313 = vmatpush.bf16.msrb.mxu0 %v3596_v26 }
  0xf0   : > { %v4207_v48 = vpop.f32.mrf.mxu1 }
  0xf1   : > { %2327 = vmatpush.bf16.msrb.mxu1 %v3604_v28  ;;  %2341 = vmatpush.bf16.msrb.mxu2 %v3612_v32 }
  0xf2   : > { %2355 = vmatpush.bf16.msrb.mxu3 %v3620_v33 }
  0xf7   : > { %v4209_v27 = vpop.f32.mrf.mxu2  ;;  %v4213_v49 = vpop.f32.mrf.mxu0 }
  0xf8   : > { %v4221_v53 = vpop.f32.mrf.mxu1  ;;  %v1992_v51 = vadd.f32 %v4209_v27, %v4191_v41  ;;  %v2019_v41 = vperm.slane %v2016_v57, 1 }
  0xf9   : > { %v4211_v54 = vpop.f32.mrf.mxu3 }
  0xfa   : > { %v1993_v56 = vadd.f32 %v4211_v54, %v4193_v42 }
  0xff   : > { %v4247_v63 = vpop.f32.mrf.mxu2 }
 0x100   : > { %v1996_v60 = vadd.f32 %v4247_v63, %v4199_v45 }
 0x101   : > { %v4249_v0 = vpop.f32.mrf.mxu3 }
 0x102   : > { %v1997_v2 = vadd.f32 %v4249_v0, %v4201_v46 }
 0x10f   : > { %v4251_v1 = vpop.f32.mrf.mxu0 }
 0x110   : > { %v4259_v4 = vpop.f32.mrf.mxu1  ;;  %v1994_v42 = vadd.f32 %v4251_v1, %v4195_v43 }
 0x111   : > { %v1995_v9 = vadd.f32 %v4259_v4, %v4205_v47  ;;  %v2021_v47 = vperm.slane %v2016_v57, 3 }
 0x117   : > { %v1611_v10 = vpop.f32.mrf.mxu3  ;;  %v4281_v14 = vpop.f32.mrf.mxu0 }
 0x118   : > { %v4289_v16 = vpop.f32.mrf.mxu1  ;;  %v2000_v58 = vadd.f32 %v1992_v51, %v1611_v10  ;;  %v1998_v46 = vadd.f32 %v4281_v14, %v4203_v52 }
 0x119   : > { %v4267_v7 = vpop.f32.mrf.mxu2  ;;  %v1999_v43 = vadd.f32 %v4289_v16, %v4213_v49 }
 0x11f   : > { %v1613_v24 = vpop.f32.mrf.mxu3 }
 0x120   : > { %v2004_v27 = vadd.f32 %v1996_v60, %v1613_v24 }
 0x121   : > { %v4303_v21 = vpop.f32.mrf.mxu2 }
 0x12f   : > { %v1625_v25 = vpop.f32.mrf.mxu0 }
 0x130   : > { %v1639_v29 = vpop.f32.mrf.mxu1  ;;  %v2001_v59 = vadd.f32 %v1993_v56, %v1625_v25 }
 0x131   : > { %v2002_v12 = vadd.f32 %v1994_v42, %v1639_v29 }
 0x137   : > { %v1653_v34 = vpop.f32.mrf.mxu2  ;;  %v1627_v36 = vpop.f32.mrf.mxu0 }
 0x138   : > { %v1641_v37 = vpop.f32.mrf.mxu1  ;;  %v2005_v54 = vadd.f32 %v1997_v2, %v1627_v36  ;;  %v2003_v0 = vadd.f32 %v1995_v9, %v1653_v34 }
 0x139   : > { %v4329_v35 = vpop.f32.mrf.mxu3  ;;  %v2006_v22 = vadd.f32 %v1998_v46, %v1641_v37 }
 0x13f   : > { %v1655_v38 = vpop.f32.mrf.mxu2 }
 0x140   : > { %v2007_v25 = vadd.f32 %v1999_v43, %v1655_v38 }
 0x141   : > { %v4331_v39 = vpop.f32.mrf.mxu3 }
 0x14f   : > { %v1945_v50 = vpop.f32.mrf.mxu0 }
 0x150   : > { %v1959_v55 = vpop.f32.mrf.mxu1  ;;  %v2008_v61 = vadd.f32 %v2000_v58, %v1945_v50 }
 0x151   : > { %v2009_v3 = vadd.f32 %v2001_v59, %v1959_v55  ;;  %v3734_v55 = vld [vmem:[%s4428_s14] ss:$0 sm:$0xff] }
 0x152   : > { %v2026_v10 = vadd.f32 %v2018_v62, %v2008_v61 }
 0x153   : > { %v2027_v13 = vadd.f32 %v2019_v41, %v2009_v3 }
 0x154   : > { %v2034_v19 = vmax.f32 %v2026_v10, 0.0 }
 0x155   : > { %v2035_v23 = vmax.f32 %v2027_v13, 0.0 }
 0x157   : > { %v1973_v5 = vpop.f32.mrf.mxu2  ;;  %v1987_v6 = vpop.f32.mrf.mxu3 }
 0x158   : > { %v1947_v8 = vpop.f32.mrf.mxu0  ;;  %v1961_v63 = vpop.f32.mrf.mxu1  ;;  %v2010_v1 = vadd.f32 %v2002_v12, %v1973_v5  ;;  %v2011_v20 = vadd.f32 %v2003_v0, %v1987_v6 }
 0x159   : > { %v2012_v45 = vadd.f32 %v2004_v27, %v1947_v8  ;;  %v2013_v11 = vadd.f32 %v2005_v54, %v1961_v63 }
 0x15a   : > { %v2028_v29 = vadd.f32 %v2020_v17, %v2010_v1  ;;  %v2029_v31 = vadd.f32 %v2021_v47, %v2011_v20  ;;  %v3946_v1 = vmov 1  }
 0x15b   : > { %v2030_v15 = vadd.f32 %v2018_v62, %v2012_v45  ;;  %v2031_v18 = vadd.f32 %v2019_v41, %v2013_v11  ;;  %3723 = vset.pattern.permute.xlu0 %v3946_v1  ;;  %3724 = vset.pattern.permute.xlu1 %v3946_v1 }
 0x15c   : > { %v2036_v33 = vmax.f32 %v2028_v29, 0.0  ;;  %v2037_v36 = vmax.f32 %v2029_v31, 0.0  ;;  %v3730_v29 = vld [vmem:[%s4422_s8] ss:$0 sm:$0xff] }
 0x15d   : > { %v2038_v4 = vmax.f32 %v2030_v15, 0.0  ;;  %v2039_v24 = vmax.f32 %v2031_v18, 0.0 }
 0x15f   : > { %v2042_v26 = vpack.c.bf16 %v2038_v4, %v2034_v19  ;;  %v1975_v28 = vpop.f32.mrf.mxu2  ;;  %v2043_v52 = vpack.c.bf16 %v2039_v24, %v2035_v23  ;;  %v1989_v30 = vpop.f32.mrf.mxu3  ;;  %v3948_v23 = vmov 3   ;;  %v3949_v24 = vmov 2  }
 0x160   : > { %v2014_v14 = vadd.f32 %v2006_v22, %v1975_v28  ;;  %v2015_v32 = vadd.f32 %v2007_v25, %v1989_v30  ;;  %v2389_v30 = vadd.f32 %v3730_v29, %v4189_v40 }
 0x161   : > { %2314 = vmatmul.bf16.vlgmr.msrb.gmra.mxu0 %v2042_v26  ;;  %2328 = vmatmul.bf16.vlgmr.msrb.gmra.mxu1 %v2043_v52  ;;  %v3731_v52 = vld [vmem:[%s4423_s9] ss:$0 sm:$0xff] }
 0x162   : > { %v2032_v49 = vadd.f32 %v2020_v17, %v2014_v14  ;;  %v2033_v16 = vadd.f32 %v2021_v47, %v2015_v32  ;;  %v3947_v17 = vmov 0   ;;  %v3732_v14 = vld [vmem:[%s4424_s10] ss:$0 sm:$0xff]  ;;  %v2407_v31 = vadd.f32 %v3731_v52, %v4207_v48 }
 0x163   : > { %3722 = vset.pattern.permute.xlu2 %v3947_v17  ;;  %v3733_v32 = vld [vmem:[%s4425_s11] ss:$0 sm:$0xff]  ;;  %v2390_v48 = vadd.f32 %v3730_v29, %v4197_v44 }
 0x164   : > { %v2040_v34 = vmax.f32 %v2032_v49, 0.0  ;;  %v2041_v50 = vmax.f32 %v2033_v16, 0.0  ;;  %v2425_v16 = vadd.f32 %v3732_v14, %v4267_v7  ;;  %v2426_v7 = vadd.f32 %v3732_v14, %v4303_v21  ;;  %v3735_v44 = vld [vmem:[%s4461_s5] ss:$0 sm:$0xff] }
 0x166   : > { %v2044_v37 = vpack.c.bf16 %v2040_v34, %v2036_v33  ;;  %v2045_v51 = vpack.c.bf16 %v2041_v50, %v2037_v36  ;;  %v2443_v50 = vadd.f32 %v3733_v32, %v4329_v35 }
 0x168   : > { %2342 = vmatmul.bf16.vlgmr.msrb.gmra.mxu2 %v2044_v37  ;;  %2356 = vmatmul.bf16.vlgmr.msrb.gmra.mxu3 %v2045_v51 }
 0x1de   : > { %v2315_v38 = vpop.f32.mrf.mxu0  ;;  %v2329_v57 = vpop.f32.mrf.mxu1 }
 0x1df   : > { %v2316_v56 = vadd.f32 %v3734_v55, %v2315_v38 }
 0x1e1   : > { %v2330_v58 = vadd.f32 %v2329_v57, %v2316_v56 }
 0x1e6   : > { %v2317_v59 = vpop.f32.mrf.mxu0  ;;  %v2331_v27 = vpop.f32.mrf.mxu1 }
 0x1e7   : > { %v2318_v2 = vadd.f32 %v3734_v55, %v2317_v59  ;;  %v2408_v55 = vadd.f32 %v3731_v52, %v4221_v53 }
 0x1e9   : > { %v2332_v5 = vadd.f32 %v2331_v27, %v2318_v2  ;;  %v2444_v2 = vadd.f32 %v3733_v32, %v4331_v39 }
 0x1eb   : > { %v2343_v60 = vpop.f32.mrf.mxu2  ;;  %v2357_v62 = vpop.f32.mrf.mxu3 }
 0x1ec   : > { %v2344_v61 = vadd.f32 %v2343_v60, %v2330_v58 }
 0x1ee   : > { %v2358_v3 = vadd.f32 %v2357_v62, %v2344_v61 }
 0x1f0   : > { %v2363_v41 = vsel %vm2362_vm0, %v2358_v3, -inf }
 0x1f1   : > { %2364 = vmax.xlane.f32.xlu0 %v2363_v41 }
 0x1f3   : > { %v2345_v42 = vpop.f32.mrf.mxu2  ;;  %v2359_v6 = vpop.f32.mrf.mxu3 }
 0x1f4   : > { %v2346_v54 = vadd.f32 %v2345_v42, %v2332_v5 }
 0x1f6   : > { %v2360_v8 = vadd.f32 %v2359_v6, %v2346_v54 }
 0x1f8   : > { %v2366_v9 = vsel %vm2362_vm0, %v2360_v8, -inf }
 0x1f9   : > { %2367 = vmax.xlane.f32.xlu0 %v2366_v9 }
 0x264   : > { %v2365_v10 = vpop.xlane.xlu0 %2364 }
 0x265   : > { %v2369_v45 = vsub.f32 %v2358_v3, %v2365_v10 }
 0x267   : > { %v2371_v63 = vmul.f32 1.442695, %v2369_v45 }
 0x269   : > { %3736 = vpow2.f32 %v2371_v63 }
 0x26c   : > { %v2368_v12 = vpop.xlane.xlu0 %2367 }
 0x26d   : > { %v2370_v13 = vsub.f32 %v2360_v8, %v2368_v12 }
 0x26f   : > { %v3737_v11 = vpop.eup %3736  ;;  %v2373_v46 = vmul.f32 1.442695, %v2370_v13 }
 0x270   : > { %v2375_v0 = vsel %vm2362_vm0, %v3737_v11, 0.0 }
 0x271   : > { %3738 = vpow2.f32 %v2373_v46  ;;  %2376 = vadd.xlane.f32.xlu1 %v2375_v0 }
 0x277   : > { %v3739_v15 = vpop.eup %3738 }
 0x278   : > { %v2378_v43 = vsel %vm2362_vm0, %v3739_v15, 0.0 }
 0x279   : > { %2379 = vadd.xlane.f32.xlu1 %v2378_v43 }
 0x2e4   : > { %v2377_v18 = vpop.xlane.xlu1 %2376 }
 0x2e5   : > { %3740 = vrcp.f32 %v2377_v18 }
 0x2eb   : > { %v3741_v19 = vpop.eup %3740 }
 0x2ec   : > { %v2380_v20 = vpop.xlane.xlu1 %2379  ;;  %v2383_v47 = vmul.f32 %v3741_v19, %v3737_v11 }
 0x2ed   : > { %3742 = vrcp.f32 %v2380_v20 }
 0x2ee   : > { %2410 = vperm.xlu0 %3723, %v2383_v47   ;;  %2393 = vperm.xlu2 %3722, %v2383_v47  }
 0x2f3   : > { %v3743_v4 = vpop.eup %3742 }
 0x2f4   : > { %v2384_v22 = vmul.f32 %v3743_v4, %v3739_v15 }
 0x2f6   : > { %2414 = vperm.xlu1 %3724, %v2384_v22   ;;  %2398 = vperm.xlu2 %3722, %v2384_v22  }
 0x2f7   : > { %3729 = vset.pattern.permute.xlu0 %v3948_v23 }
 0x2fe   : > { %3725 = vset.pattern.permute.xlu2 %v3949_v24 }
 0x2ff   : > { %2428 = vperm.xlu2 %3725, %v2383_v47  }
 0x307   : > { %3726 = vset.pattern.permute.xlu2 %v3948_v23 }
 0x308   : > { %2446 = vperm.xlu2 %3726, %v2383_v47  }
 0x310   : > { %3727 = vset.pattern.permute.xlu2 %v3949_v24 }
 0x311   : > { %2432 = vperm.xlu2 %3727, %v2384_v22  }
 0x319   : > { %3728 = vset.pattern.permute.xlu2 %v3948_v23 }
 0x31a   : > { %2450 = vperm.xlu2 %3728, %v2384_v22  }
 0x348   : > { %v2394_v25 = vpop.permute.xlu2 %2393 }
 0x349   : > { %v2401_v33 = vmul.f32 %v2394_v25, %v2389_v30 }
 0x350   : > { %v2399_v26 = vpop.permute.xlu2 %2398 }
 0x351   : > { %v2402_v58 = vmul.f32 %v2399_v26, %v2390_v48 }
 0x359   : > { %v2429_v28 = vpop.permute.xlu2 %2428 }
 0x35a   : > { %v2435_v37 = vmul.f32 %v2429_v28, %v2425_v16 }
 0x360   : > { %v2411_v49 = vpop.permute.xlu0 %2410 }
 0x361   : > { %v2417_v34 = vmul.f32 %v2411_v49, %v2407_v31 }
 0x362   : > { %v2447_v36 = vpop.permute.xlu2 %2446 }
 0x363   : > { %v2419_v51 = vadd.f32 %v2417_v34, %v2401_v33  ;;  %v2453_v40 = vmul.f32 %v2447_v36, %v2443_v50 }
 0x365   : > { %v2437_v38 = vadd.f32 %v2435_v37, %v2419_v51 }
 0x367   : > { %v2455_v56 = vadd.f32 %v2453_v40, %v2437_v38 }
 0x368   : > { %v2415_v57 = vpop.permute.xlu1 %2414 }
 0x369   : > { %v2418_v59 = vmul.f32 %v2415_v57, %v2408_v55  ;;  %v2461_v41 = vadd.f32 %v3735_v44, %v2455_v56 }
 0x36b   : > { %v2420_v60 = vadd.f32 %v2418_v59, %v2402_v58  ;;  %v2433_v61 = vpop.permute.xlu2 %2432 }
 0x36c   : > { %v2436_v62 = vmul.f32 %v2433_v61, %v2426_v7 }
 0x36e   : > { %v2438_v35 = vadd.f32 %v2436_v62, %v2420_v60 }
 0x374   : > { %v2451_v3 = vpop.permute.xlu2 %2450 }
 0x375   : > { %v2454_v53 = vmul.f32 %v2451_v3, %v2444_v2 }
 0x377   : > { %v2456_v21 = vadd.f32 %v2454_v53, %v2438_v35 }
 0x379   : > { %v2462_v27 = vadd.f32 %v3735_v44, %v2456_v21 }
 0x37b   : > { %v3632_v39 = vpack.c.bf16 %v2462_v27, %v2461_v41 }
 0x37d   : > { %3633 = vst [vmem:[%s630_s15] sm:$0xff] %v3632_v39  }
 0x37e   : > { %3891 = shalt.err (!%p3888_p8)
}
 0x37f   : > { %s3950_s0 = smov 64   ;;  %s3951_s29 = smov 4  }
 0x380   : > { %3650 = dma.vmem_to_hbm [thread:$0]  (%p4075_p5), %s2481_s16, 128, %s2483_s21, %s2468_s25, %s3950_s0, %s3950_s0, %s3951_s29  }
 0x381 PF: > { %s4463_s27 = sld [smem:[#allocation17_spill]] }
 0x382   : > { %s4464_s17 = sld [smem:[#allocation15_spill]] }
 0x387   : > { %p3677_p9 = scmp.ge.s32.totalorder %s4463_s27, 2 }
 0x388   : > { %s2497_s15 = sand.u32 1, %s4464_s17  }
 0x389   : > { %p3666_p10 = pnand %p3677_p9, %p4079_p6  ;;  %s2498_s30 = scalar_lea.sflag [#allocation4], %s2497_s15 }
 0x38b   : > { %p3667_p11 = pneg %p3666_p10 }
 0x38d   : > { %3921 = dma.done.wait (%p3667_p11), %s2498_s30, 128  }
 0x38e   : > { %3923 = vsyncadd (%p3667_p11), %s2498_s30, 4294967168  ;;  %s4466_s24 = sld [smem:[#allocation18_spill]]  ;;  %s4469_s21 = smov %s3930_s22 }
 0x38f   : > { %s4467_s23 = sld [smem:[#allocation16_spill]] }
 0x390   : > { %s4468_s26 = sld [smem:[#allocation19_spill]] }
 0x394   : > { %p29_p12 = scmp.ge.s32.totalorder %s4466_s24, 4  }
 0x395   : > { %s4470_s22 = smov %s4467_s23 }
 0x396   : > { %s4471_s23 = smov %s4468_s26  ;;  %31 = sbr.rel (!%p29_p12) target bundleno = 12 (0xc), region = 145 }
 0x39b   :  { %2504 = vsyncpa [#allocation3], 1 }
 0x39c   :  { %2506 = vsyncpa [#allocation3 + $0x1], 1 }
 0x39d   :  { %2507 = vsyncpa [#allocation6], 1 }
 0x39e   :  { %2508 = vsyncpa [#allocation9], 1 }
 0x39f   :  { %2509 = vsyncpa [#allocation4], 1 }
 0x3a0   :  { %2511 = vsyncpa [#allocation4 + $0x1], 1 }

</bundles_post_ra>
